<compile_context>
chip_gen: v5e
topology: v5e:2x2
jax: 0.10.0
libtpu: 0.0.40
codegen_flags: <defaults>
</compile_context>

<pallas_src>
import math

import jax
import jax.numpy as jnp
from jax import lax
from jax.experimental import pallas as pl
from jax.experimental.pallas import tpu as pltpu

# ---- configuration (small shapes consistent with the module) -----------------------------
B = 2
D_ENC = 32                               # d_enc_inp
NUM_RIMS = 4                             # num_rims (K)
NUM_ACTIVE = 2                           # num_active_rims (k_A)
D_HID_ALL = 128                          # d_hid_all_rims
D_RIM = D_HID_ALL // NUM_RIMS            # 32
NUM_KV_IN = 2                            # num_modules_read_input (null + input)
IN_NH, IN_DK, IN_DV = 1, 32, 64          # input attention
D_IN_ATTN_OUT = IN_DV                    # cell input feature size (d_mha_out of input attn)
COMM_NH, COMM_DK, COMM_DV = 4, 16, 16    # communication attention
COMM_RESIDUAL = True
USE_COMM_ATTN = True
SEQ_LEN = 8                              # timesteps processed per kernel call (in-kernel loop)

BR = B * NUM_RIMS                        # fused (batch, rim) rows = 8
_LOG_M = math.log(NUM_KV_IN - 1)         # number of repeated input rows among keys/values

# ---- packed operand layouts ----------------------------------------------------------------
# Weight slab: all matmul RHS fused / folded and zero-padded into one (480, 256) f32 block.
WIN_R0 = 0
WIN_ROWS = D_RIM + D_ENC                                  # 64  (rows 0..31 hx, 32..63 x)
WIN_COLS = 2 * IN_DK + D_IN_ATTN_OUT                      # 128 ([q | k | v@wo_i])
WGRU_R0 = WIN_R0 + WIN_ROWS                               # 64
WGRU_ROWS = NUM_RIMS * (D_IN_ATTN_OUT + D_RIM)            # 384 (x_exp rows, then h_exp rows)
WGRU_COLS = 2 * 3 * D_RIM                                 # 192 ([gx | gh])
WC_R0 = WGRU_R0 + WGRU_ROWS                               # 448
WC_ROWS = D_RIM                                           # 32
WC_COLS = 2 * COMM_NH * COMM_DK + COMM_NH * D_RIM         # 256 ([q | k | per-head v@wo_c])
W_ROWS = WC_R0 + WC_ROWS                                  # 480
W_COLS = 256

# Aux slab (8 rows = fused (batch, rim) rows): biases + precomputed masks.
D_GRU_LHS = NUM_RIMS * D_IN_ATTN_OUT + NUM_RIMS * D_RIM   # 384
SEL_OFF = 0                                               # block-diag select for GRU LHS
BGRU_OFF = SEL_OFF + D_GRU_LHS                            # 384: [bx(rim) | bh(rim)] per row
BOI_OFF = BGRU_OFF + 2 * 3 * D_RIM                        # 576: input-attn output bias
BOC_OFF = BOI_OFF + D_IN_ATTN_OUT                         # 640: comm-attn output bias
SB_OFF = BOC_OFF + D_RIM                                  # 672: same-batch (8,8)
TIE_OFF = SB_OFF + BR                                     # 680: col<row tie-break (8,8)
AUX_COLS = TIE_OFF + BR                                   # 688


def rims_seq_kernel(x_ref, hx0_ref, w_ref, aux_ref, out_ref, hx_scr):
    f32 = jnp.float32
    t = pl.program_id(0)

    @pl.when(t == 0)
    def _():
        hx_scr[...] = hx0_ref[...]                       # load initial hidden state once

    x = x_ref[0]                                         # (BR, D_ENC) input, repeated per rim
    hx = hx_scr[...]                                     # (BR, D_RIM) previous hidden state

    sb = aux_ref[:, SB_OFF:SB_OFF + BR]                  # (8,8): 1 iff same batch element
    tie = aux_ref[:, TIE_OFF:TIE_OFF + BR]               # (8,8): 1 iff col index < row index

    # ---- input attention (wo_i folded into the value projection) ------------------------
    qkvo = jnp.dot(jnp.concatenate([hx, x], axis=1),
                   w_ref[WIN_R0:WIN_R0 + WIN_ROWS, 0:WIN_COLS],
                   preferred_element_type=f32)           # (BR, 128) = [q | k | v@wo_i]
    q = qkvo[:, 0:IN_DK]
    k = qkvo[:, IN_DK:2 * IN_DK]
    vo = qkvo[:, 2 * IN_DK:2 * IN_DK + D_IN_ATTN_OUT]
    logit = jnp.sum(q * k, axis=-1, keepdims=True) * (1.0 / (IN_DK ** 0.5))      # (BR, 1)
    p_inp = jax.nn.sigmoid(logit + _LOG_M)               # total attention on the input row
    inp_use = p_inp * vo + aux_ref[:, BOI_OFF:BOI_OFF + D_IN_ATTN_OUT]           # (BR, 64)

    # ---- activation mask -----------------------------------------------------------------
    # Deactivate, per batch element, the K - k_A rims with the LARGEST null attention, i.e.
    # the SMALLEST logit.  rank[i] = # same-batch rims with smaller logit (ties -> lower index
    # loses), mask = 1 iff rank >= K - k_A.  l_j lays the logit along lanes via a tiny K=1
    # outer product (kept over a materialized (8,8) transpose for lowering robustness).
    l_r = jnp.broadcast_to(logit, (BR, BR))                                      # [i,j] = l_i
    l_j = lax.dot_general(jnp.ones((BR, 1), f32), logit,
                          (((1,), (1,)), ((), ())),
                          preferred_element_type=f32)                            # [i,j] = l_j
    lt = (l_j < l_r).astype(f32)
    eq = (l_j == l_r).astype(f32)
    rank = jnp.sum(sb * (lt + eq * tie), axis=1, keepdims=True)                  # (BR, 1)
    mask_col = jnp.where(rank >= float(NUM_RIMS - NUM_ACTIVE), 1.0, 0.0)
    mask = jnp.broadcast_to(mask_col, (BR, D_RIM))                               # (BR, D_RIM)

    # ---- independent dynamics: per-RIM GRU, one fused block-diagonal matmul ---------------
    # Row i = (b, r) is expanded into column block r (precomputed select mask) so a single
    # dense dot against the stacked per-rim weights gives [gx | gh] for every row at once.
    sel = aux_ref[:, SEL_OFF:SEL_OFF + D_GRU_LHS]                                # (BR, 384)
    lhs = jnp.concatenate([inp_use] * NUM_RIMS + [hx] * NUM_RIMS, axis=1) * sel  # (BR, 384)
    g = jnp.dot(lhs, w_ref[WGRU_R0:WGRU_R0 + WGRU_ROWS, 0:WGRU_COLS],
                preferred_element_type=f32) + aux_ref[:, BGRU_OFF:BGRU_OFF + 2 * 3 * D_RIM]
    H = D_RIM
    gx = g[:, 0:3 * H]
    gh = g[:, 3 * H:6 * H]
    rg = jax.nn.sigmoid(gx[:, 0:H] + gh[:, 0:H])
    zg = jax.nn.sigmoid(gx[:, H:2 * H] + gh[:, H:2 * H])
    ng = jnp.tanh(gx[:, 2 * H:3 * H] + rg * gh[:, 2 * H:3 * H])
    h_cell = (1.0 - zg) * ng + zg * hx                                           # (BR, D_RIM)

    # ---- communication attention (BlockedGradients forward == identity) -------------------
    h_comm = h_cell
    if USE_COMM_ATTN:
        qkvo_c = jnp.dot(h_cell, w_ref[WC_R0:WC_R0 + WC_ROWS, 0:WC_COLS],
                         preferred_element_type=f32)     # (BR, 256) = [q | k | per-head v@wo_c]
        add_mask = (sb - 1.0) * 1e30                     # 0 within batch, -1e30 across batches
        k_off = COMM_NH * COMM_DK
        v_off = 2 * k_off
        comm = jnp.zeros((BR, D_RIM), f32)
        for h in range(COMM_NH):
            qh = qkvo_c[:, h * COMM_DK:(h + 1) * COMM_DK]
            kh = qkvo_c[:, k_off + h * COMM_DK:k_off + (h + 1) * COMM_DK]
            voh = qkvo_c[:, v_off + h * D_RIM:v_off + (h + 1) * D_RIM]
            lg = lax.dot_general(qh, kh, (((1,), (1,)), ((), ())),
                                 preferred_element_type=f32) * (1.0 / (COMM_DK ** 0.5))
            lg = lg + add_mask
            lg = lg - jnp.max(lg, axis=-1, keepdims=True)
            e = jnp.exp(lg)
            att = e / jnp.sum(e, axis=-1, keepdims=True)            # exact reciprocal
            comm = comm + jnp.dot(att, voh, preferred_element_type=f32)
        comm = comm + aux_ref[:, BOC_OFF:BOC_OFF + D_RIM]
        if COMM_RESIDUAL:
            comm = comm + h_cell                          # MHA-internal residual
        h_comm = h_cell + comm                            # cell-level residual

    # ---- masking of states: inactive RIMs keep their previous-timestep state --------------
    h_final = mask * h_comm + (1.0 - mask) * hx
    hx_scr[...] = h_final                                 # carry to the next timestep
    out_ref[0] = jnp.concatenate([h_final, mask], axis=1)  # lane-merged [hx | mask] store


def pack_kernel_params(p):
    """Fuse / fold / stack raw parameters into the two resident slabs (done once)."""
    f32 = jnp.float32
    # input attention: block_diag(wq_i, [wk_i | wv_i @ wo_i])
    wvo_i = p["wv_i"] @ p["wo_i"]                                                # (32, 64)
    w_in = jnp.zeros((WIN_ROWS, W_COLS), f32)
    w_in = w_in.at[0:D_RIM, 0:IN_DK].set(p["wq_i"])
    w_in = w_in.at[D_RIM:D_RIM + D_ENC, IN_DK:2 * IN_DK].set(p["wk_i"])
    w_in = w_in.at[D_RIM:D_RIM + D_ENC, 2 * IN_DK:2 * IN_DK + D_IN_ATTN_OUT].set(wvo_i)

    # per-RIM GRU: block-diag mapping [x_exp | h_exp] -> [gx | gh]
    w_gru = jnp.zeros((WGRU_ROWS, W_COLS), f32)
    w_gru = w_gru.at[0:NUM_RIMS * D_IN_ATTN_OUT, 0:3 * D_RIM].set(
        p["wx"].reshape(NUM_RIMS * D_IN_ATTN_OUT, 3 * D_RIM))
    w_gru = w_gru.at[NUM_RIMS * D_IN_ATTN_OUT:D_GRU_LHS, 3 * D_RIM:6 * D_RIM].set(
        p["wh"].reshape(NUM_RIMS * D_RIM, 3 * D_RIM))

    # comm attention: [wq_c | wk_c | per-head (wv_c_h @ wo_c_h)]
    wvo_c = jnp.concatenate(
        [p["wv_c"][:, h * COMM_DV:(h + 1) * COMM_DV] @ p["wo_c"][h * COMM_DV:(h + 1) * COMM_DV, :]
         for h in range(COMM_NH)], axis=1)                                       # (32, 128)
    w_c = jnp.concatenate([p["wq_c"], p["wk_c"], wvo_c], axis=1)                 # (32, 256)
    w_c = jnp.pad(w_c, ((0, 0), (0, W_COLS - w_c.shape[1])))

    w_slab = jnp.concatenate([w_in, w_gru, w_c], axis=0)                         # (480, 256)

    # aux slab: select mask, bias rows, same-batch / tie-break matrices
    rim_of_row = (jnp.arange(BR) % NUM_RIMS)[:, None]
    sel_x = (jnp.arange(NUM_RIMS * D_IN_ATTN_OUT)[None, :] // D_IN_ATTN_OUT == rim_of_row)
    sel_h = (jnp.arange(NUM_RIMS * D_RIM)[None, :] // D_RIM == rim_of_row)
    sel = jnp.concatenate([sel_x, sel_h], axis=1).astype(f32)                    # (8, 384)
    b_gru = jnp.tile(jnp.concatenate([p["bx"], p["bh"]], axis=1), (B, 1))        # (8, 192)
    b_oi = jnp.broadcast_to(p["bo_i"], (BR, D_IN_ATTN_OUT))                      # (8, 64)
    b_oc = jnp.broadcast_to(p["bo_c"], (BR, D_RIM))                              # (8, 32)
    batch_of_row = jnp.arange(BR) // NUM_RIMS
    sb = (batch_of_row[:, None] == batch_of_row[None, :]).astype(f32)            # (8, 8)
    tie = (jnp.arange(BR)[None, :] < jnp.arange(BR)[:, None]).astype(f32)        # (8, 8)
    aux = jnp.concatenate([sel, b_gru, b_oi, b_oc, sb, tie], axis=1)             # (8, 688)
    return {"w_slab": w_slab.astype(f32), "aux": aux.astype(f32)}


def rims_sequence_forward(x_seq, hx0, kparams):
    """x_seq: [T, B, D_ENC], hx0: [B, R, D_RIM] -> (hx_seq, mask_seq), both [T, B, R, D_RIM]."""
    T = x_seq.shape[0]
    x_rep = jnp.broadcast_to(x_seq.reshape(T, B, 1, D_ENC),
                             (T, B, NUM_RIMS, D_ENC)).reshape(T, BR, D_ENC)
    hx_flat = hx0.reshape(BR, D_RIM).astype(jnp.float32)
    w_slab = kparams["w_slab"]
    aux = kparams["aux"]

    out = pl.pallas_call(
        rims_seq_kernel,
        grid=(T,),                                              # in-kernel timestep loop
        in_specs=[
            pl.BlockSpec((1, BR, D_ENC), lambda t: (t, 0, 0)),  # streamed per timestep
            pl.BlockSpec((BR, D_RIM), lambda t: (0, 0)),        # initial state (used at t==0)
            pl.BlockSpec((W_ROWS, W_COLS), lambda t: (0, 0)),   # resident weight slab
            pl.BlockSpec((BR, AUX_COLS), lambda t: (0, 0)),     # resident bias/mask slab
        ],
        out_specs=pl.BlockSpec((1, BR, 2 * D_RIM), lambda t: (t, 0, 0)),
        out_shape=jax.ShapeDtypeStruct((T, BR, 2 * D_RIM), jnp.float32),
        scratch_shapes=[pltpu.VMEM((BR, D_RIM), jnp.float32)],  # hidden-state carry
        compiler_params=pltpu.CompilerParams(dimension_semantics=("arbitrary",)),
    )(x_rep, hx_flat, w_slab, aux)

    hx_seq = out[:, :, 0:D_RIM].reshape(T, B, NUM_RIMS, D_RIM)
    mask_seq = out[:, :, D_RIM:2 * D_RIM].reshape(T, B, NUM_RIMS, D_RIM)
    return hx_seq, mask_seq


def rims_cell_forward(x, hx, kparams):
    """Single-timestep module API: x [B, 1, D_ENC], hx [B, R, D_RIM] -> (hx_new, mask)."""
    hx_seq, mask_seq = rims_sequence_forward(x.reshape(1, B, D_ENC), hx, kparams)
    return hx_seq[0], mask_seq[0]


def init_params(key):
    def dense(k, shape, fan_in, scale=1.0):
        return (scale * jax.random.normal(k, shape, jnp.float32) / jnp.sqrt(fan_in))

    ks = jax.random.split(key, 14)
    p = {}
    p["wq_i"] = dense(ks[0], (D_RIM, IN_NH * IN_DK), D_RIM)
    p["wk_i"] = dense(ks[1], (D_ENC, IN_NH * IN_DK), D_ENC)
    p["wv_i"] = dense(ks[2], (D_ENC, IN_NH * IN_DV), D_ENC)
    p["wo_i"] = dense(ks[3], (IN_NH * IN_DV, D_IN_ATTN_OUT), IN_NH * IN_DV)
    p["bo_i"] = dense(ks[4], (1, D_IN_ATTN_OUT), 1.0, scale=0.01)
    p["wx"] = dense(ks[5], (NUM_RIMS, D_IN_ATTN_OUT, 3 * D_RIM), D_IN_ATTN_OUT)
    p["wh"] = dense(ks[6], (NUM_RIMS, D_RIM, 3 * D_RIM), D_RIM)
    p["bx"] = dense(ks[7], (NUM_RIMS, 3 * D_RIM), 1.0, scale=0.01)
    p["bh"] = dense(ks[8], (NUM_RIMS, 3 * D_RIM), 1.0, scale=0.01)
    p["wq_c"] = dense(ks[9], (D_RIM, COMM_NH * COMM_DK), D_RIM)
    p["wk_c"] = dense(ks[10], (D_RIM, COMM_NH * COMM_DK), D_RIM)
    p["wv_c"] = dense(ks[11], (D_RIM, COMM_NH * COMM_DV), D_RIM)
    p["wo_c"] = dense(ks[12], (COMM_NH * COMM_DV, D_RIM), COMM_NH * COMM_DV)
    p["bo_c"] = dense(ks[13], (1, D_RIM), 1.0, scale=0.01)
    return p


def rims_cell_reference(x, hx, p):
    """Pure-JAX reference of one timestep of the same forward semantics (for verification)."""
    def one(xb, hb):                                     # xb: (1, D_ENC), hb: (R, D_RIM)
        kv = jnp.concatenate(
            [jnp.zeros((1, D_ENC), jnp.float32),
             jnp.broadcast_to(xb, (NUM_KV_IN - 1, D_ENC))], axis=0)
        q = hb @ p["wq_i"]; k = kv @ p["wk_i"]; v = kv @ p["wv_i"]
        iatt = jax.nn.softmax((q @ k.T) / (IN_DK ** 0.5), axis=-1)
        inp_use = (iatt @ v) @ p["wo_i"] + p["bo_i"]
        null = iatt[:, 0]
        bottom = jnp.argsort(-null)[: NUM_RIMS - NUM_ACTIVE]
        mask_vec = jnp.ones((NUM_RIMS,), jnp.float32).at[bottom].set(0.0)
        mask = jnp.broadcast_to(mask_vec[:, None], (NUM_RIMS, D_RIM))
        H = D_RIM
        gx = jnp.einsum("rd,rdh->rh", inp_use, p["wx"]) + p["bx"]
        gh = jnp.einsum("rd,rdh->rh", hb, p["wh"]) + p["bh"]
        rg = jax.nn.sigmoid(gx[:, :H] + gh[:, :H])
        zg = jax.nn.sigmoid(gx[:, H:2 * H] + gh[:, H:2 * H])
        ng = jnp.tanh(gx[:, 2 * H:] + rg * gh[:, 2 * H:])
        h_cell = (1.0 - zg) * ng + zg * hb
        h_comm = h_cell
        if USE_COMM_ATTN:
            outs = []
            for hh in range(COMM_NH):
                qh = h_cell @ p["wq_c"][:, hh * COMM_DK:(hh + 1) * COMM_DK]
                kh = h_cell @ p["wk_c"][:, hh * COMM_DK:(hh + 1) * COMM_DK]
                vh = h_cell @ p["wv_c"][:, hh * COMM_DV:(hh + 1) * COMM_DV]
                ah = jax.nn.softmax((qh @ kh.T) / (COMM_DK ** 0.5), axis=-1)
                outs.append(ah @ vh)
            comm = jnp.concatenate(outs, axis=1) @ p["wo_c"] + p["bo_c"]
            if COMM_RESIDUAL:
                comm = comm + h_cell
            h_comm = h_cell + comm
        h_final = mask * h_comm + (1.0 - mask) * hb
        return h_final, mask
    return jax.vmap(one)(x, hx)


if __name__ == "__main__":
    key = jax.random.PRNGKey(0)
    kx, kh, kp_key = jax.random.split(key, 3)
    x_seq = jax.random.normal(kx, (SEQ_LEN, B, D_ENC), jnp.float32)
    hx0 = 0.5 * jax.random.normal(kh, (B, NUM_RIMS, D_RIM), jnp.float32)
    params = init_params(kp_key)
    kparams = pack_kernel_params(params)

    # one pallas_call runs all SEQ_LEN timesteps with resident weights and an on-chip carry
    hx_seq, mask_seq = rims_sequence_forward(x_seq, hx0, kparams)
    jax.block_until_ready((hx_seq, mask_seq))

    # pure-JAX reference, stepped over time
    hx_ref_steps, mask_ref_steps = [], []
    hx_ref = hx0
    for t in range(SEQ_LEN):
        hx_ref, m_ref = rims_cell_reference(x_seq[t].reshape(B, 1, D_ENC), hx_ref, params)
        hx_ref_steps.append(hx_ref)
        mask_ref_steps.append(m_ref)
    hx_ref_seq = jnp.stack(hx_ref_steps)
    mask_ref_seq = jnp.stack(mask_ref_steps)

    assert hx_seq.shape == (SEQ_LEN, B, NUM_RIMS, D_RIM)
    assert mask_seq.shape == (SEQ_LEN, B, NUM_RIMS, D_RIM)
    assert jnp.allclose(mask_seq, mask_ref_seq), "mask mismatch vs reference"
    assert jnp.allclose(hx_seq, hx_ref_seq, atol=1e-3, rtol=1e-3), "state mismatch vs reference"
    print("KERNEL_OK")
</pallas_src>

<mosaic_0001>
module attributes {stable_mosaic.version = 11 : i64} {
  func.func @rims_seq_kernel(%arg0: i32, %arg1: memref<1x8x32xf32, #tpu.memory_space<vmem>>, %arg2: memref<8x32xf32, #tpu.memory_space<vmem>>, %arg3: memref<480x256xf32, #tpu.memory_space<vmem>>, %arg4: memref<8x688xf32, #tpu.memory_space<vmem>>, %arg5: memref<1x8x64xf32, #tpu.memory_space<vmem>>, %arg6: memref<8x32xf32, #tpu.memory_space<vmem>>) attributes {dimension_semantics = [#tpu.dimension_semantics<arbitrary>], iteration_bounds = array<i64: 8>, scalar_prefetch = 0 : i64, scratch_operands = 1 : i64, tpu.core_type = #tpu.core_type<tc>, window_params = [{transform_indices = @transform_0, window_bounds = array<i64: 1, 8, 32>}, {pipeline_mode = #tpu.pipeline_mode<synchronous>, transform_indices = @transform_1, window_bounds = array<i64: 8, 32>}, {pipeline_mode = #tpu.pipeline_mode<synchronous>, transform_indices = @transform_2, window_bounds = array<i64: 480, 256>}, {pipeline_mode = #tpu.pipeline_mode<synchronous>, transform_indices = @transform_3, window_bounds = array<i64: 8, 688>}, {transform_indices = @transform_4, window_bounds = array<i64: 1, 8, 64>}]} {
    %c0_i32 = arith.constant 0 : i32
    %0 = arith.cmpi eq, %arg0, %c0_i32 : i32
    %1 = arith.extui %0 : i1 to i32
    %c0_i32_0 = arith.constant 0 : i32
    %2 = arith.cmpi ne, %1, %c0_i32_0 : i32
    scf.if %2 {
      %c0_60 = arith.constant 0 : index
      %c0_61 = arith.constant 0 : index
      %180 = vector.load %arg2[%c0_60, %c0_61] : memref<8x32xf32, #tpu.memory_space<vmem>>, vector<8x32xf32>
      %c0_62 = arith.constant 0 : index
      %c0_63 = arith.constant 0 : index
      %181 = vector.load %arg6[%c0_62, %c0_63] : memref<8x32xf32, #tpu.memory_space<vmem>>, vector<8x32xf32>
      tpu.vector_store %arg6[%c0_62, %c0_63], %180 {strides = array<i32>} : memref<8x32xf32, #tpu.memory_space<vmem>>, vector<8x32xf32>,
    } else {
    }
    %c0 = arith.constant 0 : index
    %c0_1 = arith.constant 0 : index
    %c0_2 = arith.constant 0 : index
    %3 = vector.load %arg1[%c0, %c0_1, %c0_2] : memref<1x8x32xf32, #tpu.memory_space<vmem>>, vector<1x8x32xf32>
    %4 = vector.shape_cast %3 : vector<1x8x32xf32> to vector<8x32xf32>
    %c0_3 = arith.constant 0 : index
    %c0_4 = arith.constant 0 : index
    %5 = vector.load %arg6[%c0_3, %c0_4] : memref<8x32xf32, #tpu.memory_space<vmem>>, vector<8x32xf32>
    %c0_5 = arith.constant 0 : index
    %c672 = arith.constant 672 : index
    %6 = vector.load %arg4[%c0_5, %c672] : memref<8x688xf32, #tpu.memory_space<vmem>>, vector<8x8xf32>
    %c0_6 = arith.constant 0 : index
    %c680 = arith.constant 680 : index
    %7 = vector.load %arg4[%c0_6, %c680] : memref<8x688xf32, #tpu.memory_space<vmem>>, vector<8x8xf32>
    %8 = tpu.concatenate %5, %4 in 1 : vector<8x32xf32>, vector<8x32xf32> -> vector<8x64xf32>
    %c0_7 = arith.constant 0 : index
    %c0_8 = arith.constant 0 : index
    %9 = vector.load %arg3[%c0_7, %c0_8] : memref<480x256xf32, #tpu.memory_space<vmem>>, vector<64x128xf32>
    %cst = arith.constant dense<0.000000e+00> : vector<8x128xf32>
    %10 = tpu.matmul %8, %9, %cst {dimension_numbers = #tpu.dot_dimension_numbers<[1], [0], [0], [1], [0, 0, 1, 1], [], []>} : vector<8x64xf32>, vector<64x128xf32>, vector<8x128xf32> -> vector<8x128xf32>
    %11 = vector.extract_strided_slice %10 {offsets = [0, 0], sizes = [8, 32], strides = [1, 1]} : vector<8x128xf32> to vector<8x32xf32>
    %12 = vector.extract_strided_slice %10 {offsets = [0, 32], sizes = [8, 32], strides = [1, 1]} : vector<8x128xf32> to vector<8x32xf32>
    %13 = vector.extract_strided_slice %10 {offsets = [0, 64], sizes = [8, 64], strides = [1, 1]} : vector<8x128xf32> to vector<8x64xf32>
    %14 = arith.mulf %11, %12 : vector<8x32xf32>
    %cst_9 = arith.constant dense<0.000000e+00> : vector<8xf32>
    %15 = vector.multi_reduction <add>, %14, %cst_9 [1] : vector<8x32xf32> to vector<8xf32>
    %16 = vector.shape_cast %15 : vector<8xf32> to vector<8x1xf32>
    %cst_10 = arith.constant 0.176776692 : f32
    %17 = vector.broadcast %cst_10 : f32 to vector<8x1xf32>
    %18 = arith.mulf %16, %17 : vector<8x1xf32>
    %cst_11 = arith.constant 0.000000e+00 : f32
    %19 = vector.broadcast %cst_11 : f32 to vector<8x1xf32>
    %20 = arith.addf %18, %19 : vector<8x1xf32>
    %21 = arith.negf %20 : vector<8x1xf32>
    %22 = math.exp %21 : vector<8x1xf32>
    %cst_12 = arith.constant 1.000000e+00 : f32
    %23 = vector.broadcast %cst_12 : f32 to vector<8x1xf32>
    %24 = arith.addf %23, %22 : vector<8x1xf32>
    %25 = arith.divf %23, %24 : vector<8x1xf32>
    %26 = vector.broadcast %25 : vector<8x1xf32> to vector<8x64xf32>
    %27 = arith.mulf %26, %13 : vector<8x64xf32>
    %c0_13 = arith.constant 0 : index
    %c576 = arith.constant 576 : index
    %28 = vector.load %arg4[%c0_13, %c576] : memref<8x688xf32, #tpu.memory_space<vmem>>, vector<8x64xf32>
    %29 = arith.addf %27, %28 : vector<8x64xf32>
    %30 = vector.shape_cast %18 : vector<8x1xf32> to vector<8x1xf32>
    %31 = vector.broadcast %30 : vector<8x1xf32> to vector<8x8xf32>
    %cst_14 = arith.constant 1.000000e+00 : f32
    %32 = vector.broadcast %cst_14 : f32 to vector<8x1xf32>
    %cst_15 = arith.constant dense<0.000000e+00> : vector<8x8xf32>
    %33 = tpu.matmul %32, %18, %cst_15 {dimension_numbers = #tpu.dot_dimension_numbers<[1], [1], [0], [0], [0, 0, 1, 0], [], []>} : vector<8x1xf32>, vector<8x1xf32>, vector<8x8xf32> -> vector<8x8xf32>
    %34 = arith.cmpf olt, %33, %31 : vector<8x8xf32>
    %35 = arith.extui %34 : vector<8x8xi1> to vector<8x8xi32>
    %36 = arith.sitofp %35 : vector<8x8xi32> to vector<8x8xf32>
    %37 = arith.cmpf oeq, %33, %31 : vector<8x8xf32>
    %38 = arith.extui %37 : vector<8x8xi1> to vector<8x8xi32>
    %39 = arith.sitofp %38 : vector<8x8xi32> to vector<8x8xf32>
    %40 = arith.mulf %39, %7 : vector<8x8xf32>
    %41 = arith.addf %36, %40 : vector<8x8xf32>
    %42 = arith.mulf %6, %41 : vector<8x8xf32>
    %cst_16 = arith.constant dense<0.000000e+00> : vector<8xf32>
    %43 = vector.multi_reduction <add>, %42, %cst_16 [1] : vector<8x8xf32> to vector<8xf32>
    %44 = vector.shape_cast %43 : vector<8xf32> to vector<8x1xf32>
    %cst_17 = arith.constant 2.000000e+00 : f32
    %45 = vector.broadcast %cst_17 : f32 to vector<8x1xf32>
    %46 = arith.cmpf oge, %44, %45 : vector<8x1xf32>
    %cst_18 = arith.constant 1.000000e+00 : f32
    %cst_19 = arith.constant 0.000000e+00 : f32
    %47 = vector.broadcast %cst_18 : f32 to vector<8x1xf32>
    %48 = vector.broadcast %cst_19 : f32 to vector<8x1xf32>
    %49 = arith.select %46, %47, %48 : vector<8x1xi1>, vector<8x1xf32>
    %50 = vector.shape_cast %49 : vector<8x1xf32> to vector<8x1xf32>
    %51 = vector.broadcast %50 : vector<8x1xf32> to vector<8x32xf32>
    %c0_20 = arith.constant 0 : index
    %c0_21 = arith.constant 0 : index
    %52 = vector.load %arg4[%c0_20, %c0_21] : memref<8x688xf32, #tpu.memory_space<vmem>>, vector<8x384xf32>
    %53 = tpu.concatenate %29, %29, %29, %29, %5, %5, %5, %5 in 1 : vector<8x64xf32>, vector<8x64xf32>, vector<8x64xf32>, vector<8x64xf32>, vector<8x32xf32>, vector<8x32xf32>, vector<8x32xf32>, vector<8x32xf32> -> vector<8x384xf32>
    %54 = arith.mulf %53, %52 : vector<8x384xf32>
    %c64 = arith.constant 64 : index
    %c0_22 = arith.constant 0 : index
    %55 = vector.load %arg3[%c64, %c0_22] : memref<480x256xf32, #tpu.memory_space<vmem>>, vector<384x192xf32>
    %cst_23 = arith.constant dense<0.000000e+00> : vector<8x192xf32>
    %56 = tpu.matmul %54, %55, %cst_23 {dimension_numbers = #tpu.dot_dimension_numbers<[1], [0], [0], [1], [0, 0, 1, 1], [], []>} : vector<8x384xf32>, vector<384x192xf32>, vector<8x192xf32> -> vector<8x192xf32>
    %c0_24 = arith.constant 0 : index
    %c384 = arith.constant 384 : index
    %57 = vector.load %arg4[%c0_24, %c384] : memref<8x688xf32, #tpu.memory_space<vmem>>, vector<8x192xf32>
    %58 = arith.addf %56, %57 : vector<8x192xf32>
    %59 = vector.extract_strided_slice %58 {offsets = [0, 0], sizes = [8, 96], strides = [1, 1]} : vector<8x192xf32> to vector<8x96xf32>
    %60 = vector.extract_strided_slice %58 {offsets = [0, 96], sizes = [8, 96], strides = [1, 1]} : vector<8x192xf32> to vector<8x96xf32>
    %61 = vector.extract_strided_slice %59 {offsets = [0, 0], sizes = [8, 32], strides = [1, 1]} : vector<8x96xf32> to vector<8x32xf32>
    %62 = vector.extract_strided_slice %60 {offsets = [0, 0], sizes = [8, 32], strides = [1, 1]} : vector<8x96xf32> to vector<8x32xf32>
    %63 = arith.addf %61, %62 : vector<8x32xf32>
    %64 = arith.negf %63 : vector<8x32xf32>
    %65 = math.exp %64 : vector<8x32xf32>
    %cst_25 = arith.constant 1.000000e+00 : f32
    %66 = vector.broadcast %cst_25 : f32 to vector<8x32xf32>
    %67 = arith.addf %66, %65 : vector<8x32xf32>
    %68 = arith.divf %66, %67 : vector<8x32xf32>
    %69 = vector.extract_strided_slice %59 {offsets = [0, 32], sizes = [8, 32], strides = [1, 1]} : vector<8x96xf32> to vector<8x32xf32>
    %70 = vector.extract_strided_slice %60 {offsets = [0, 32], sizes = [8, 32], strides = [1, 1]} : vector<8x96xf32> to vector<8x32xf32>
    %71 = arith.addf %69, %70 : vector<8x32xf32>
    %72 = arith.negf %71 : vector<8x32xf32>
    %73 = math.exp %72 : vector<8x32xf32>
    %cst_26 = arith.constant 1.000000e+00 : f32
    %74 = vector.broadcast %cst_26 : f32 to vector<8x32xf32>
    %75 = arith.addf %74, %73 : vector<8x32xf32>
    %76 = arith.divf %74, %75 : vector<8x32xf32>
    %77 = vector.extract_strided_slice %59 {offsets = [0, 64], sizes = [8, 32], strides = [1, 1]} : vector<8x96xf32> to vector<8x32xf32>
    %78 = vector.extract_strided_slice %60 {offsets = [0, 64], sizes = [8, 32], strides = [1, 1]} : vector<8x96xf32> to vector<8x32xf32>
    %79 = arith.mulf %68, %78 : vector<8x32xf32>
    %80 = arith.addf %77, %79 : vector<8x32xf32>
    %81 = math.tanh %80 : vector<8x32xf32>
    %cst_27 = arith.constant 1.000000e+00 : f32
    %82 = vector.broadcast %cst_27 : f32 to vector<8x32xf32>
    %83 = arith.subf %82, %76 : vector<8x32xf32>
    %84 = arith.mulf %83, %81 : vector<8x32xf32>
    %85 = arith.mulf %76, %5 : vector<8x32xf32>
    %86 = arith.addf %84, %85 : vector<8x32xf32>
    %c448 = arith.constant 448 : index
    %c0_28 = arith.constant 0 : index
    %87 = vector.load %arg3[%c448, %c0_28] : memref<480x256xf32, #tpu.memory_space<vmem>>, vector<32x256xf32>
    %cst_29 = arith.constant dense<0.000000e+00> : vector<8x256xf32>
    %88 = tpu.matmul %86, %87, %cst_29 {dimension_numbers = #tpu.dot_dimension_numbers<[1], [0], [0], [1], [0, 0, 1, 1], [], []>} : vector<8x32xf32>, vector<32x256xf32>, vector<8x256xf32> -> vector<8x256xf32>
    %cst_30 = arith.constant 1.000000e+00 : f32
    %89 = vector.broadcast %cst_30 : f32 to vector<8x8xf32>
    %90 = arith.subf %6, %89 : vector<8x8xf32>
    %cst_31 = arith.constant 1.000000e+30 : f32
    %91 = vector.broadcast %cst_31 : f32 to vector<8x8xf32>
    %92 = arith.mulf %90, %91 : vector<8x8xf32>
    %cst_32 = arith.constant 0.000000e+00 : f32
    %93 = vector.broadcast %cst_32 : f32 to vector<8x32xf32>
    %94 = vector.extract_strided_slice %88 {offsets = [0, 0], sizes = [8, 16], strides = [1, 1]} : vector<8x256xf32> to vector<8x16xf32>
    %95 = vector.extract_strided_slice %88 {offsets = [0, 64], sizes = [8, 16], strides = [1, 1]} : vector<8x256xf32> to vector<8x16xf32>
    %96 = vector.extract_strided_slice %88 {offsets = [0, 128], sizes = [8, 32], strides = [1, 1]} : vector<8x256xf32> to vector<8x32xf32>
    %cst_33 = arith.constant dense<0.000000e+00> : vector<8x8xf32>
    %97 = tpu.matmul %94, %95, %cst_33 {dimension_numbers = #tpu.dot_dimension_numbers<[1], [1], [0], [0], [0, 0, 1, 0], [], []>} : vector<8x16xf32>, vector<8x16xf32>, vector<8x8xf32> -> vector<8x8xf32>
    %cst_34 = arith.constant 2.500000e-01 : f32
    %98 = vector.broadcast %cst_34 : f32 to vector<8x8xf32>
    %99 = arith.mulf %97, %98 : vector<8x8xf32>
    %100 = arith.addf %99, %92 : vector<8x8xf32>
    %cst_35 = arith.constant dense<0xFF800000> : vector<8xf32>
    %101 = vector.multi_reduction <maximumf>, %100, %cst_35 [1] : vector<8x8xf32> to vector<8xf32>
    %102 = vector.shape_cast %101 : vector<8xf32> to vector<8x1xf32>
    %103 = vector.broadcast %102 : vector<8x1xf32> to vector<8x8xf32>
    %104 = arith.subf %100, %103 : vector<8x8xf32>
    %105 = math.exp %104 : vector<8x8xf32>
    %cst_36 = arith.constant dense<0.000000e+00> : vector<8xf32>
    %106 = vector.multi_reduction <add>, %105, %cst_36 [1] : vector<8x8xf32> to vector<8xf32>
    %107 = vector.shape_cast %106 : vector<8xf32> to vector<8x1xf32>
    %108 = vector.broadcast %107 : vector<8x1xf32> to vector<8x8xf32>
    %109 = arith.divf %105, %108 : vector<8x8xf32>
    %cst_37 = arith.constant dense<0.000000e+00> : vector<8x32xf32>
    %110 = tpu.matmul %109, %96, %cst_37 {dimension_numbers = #tpu.dot_dimension_numbers<[1], [0], [0], [1], [0, 0, 1, 1], [], []>} : vector<8x8xf32>, vector<8x32xf32>, vector<8x32xf32> -> vector<8x32xf32>
    %111 = arith.addf %93, %110 : vector<8x32xf32>
    %112 = vector.extract_strided_slice %88 {offsets = [0, 16], sizes = [8, 16], strides = [1, 1]} : vector<8x256xf32> to vector<8x16xf32>
    %113 = vector.extract_strided_slice %88 {offsets = [0, 80], sizes = [8, 16], strides = [1, 1]} : vector<8x256xf32> to vector<8x16xf32>
    %114 = vector.extract_strided_slice %88 {offsets = [0, 160], sizes = [8, 32], strides = [1, 1]} : vector<8x256xf32> to vector<8x32xf32>
    %cst_38 = arith.constant dense<0.000000e+00> : vector<8x8xf32>
    %115 = tpu.matmul %112, %113, %cst_38 {dimension_numbers = #tpu.dot_dimension_numbers<[1], [1], [0], [0], [0, 0, 1, 0], [], []>} : vector<8x16xf32>, vector<8x16xf32>, vector<8x8xf32> -> vector<8x8xf32>
    %cst_39 = arith.constant 2.500000e-01 : f32
    %116 = vector.broadcast %cst_39 : f32 to vector<8x8xf32>
    %117 = arith.mulf %115, %116 : vector<8x8xf32>
    %118 = arith.addf %117, %92 : vector<8x8xf32>
    %cst_40 = arith.constant dense<0xFF800000> : vector<8xf32>
    %119 = vector.multi_reduction <maximumf>, %118, %cst_40 [1] : vector<8x8xf32> to vector<8xf32>
    %120 = vector.shape_cast %119 : vector<8xf32> to vector<8x1xf32>
    %121 = vector.broadcast %120 : vector<8x1xf32> to vector<8x8xf32>
    %122 = arith.subf %118, %121 : vector<8x8xf32>
    %123 = math.exp %122 : vector<8x8xf32>
    %cst_41 = arith.constant dense<0.000000e+00> : vector<8xf32>
    %124 = vector.multi_reduction <add>, %123, %cst_41 [1] : vector<8x8xf32> to vector<8xf32>
    %125 = vector.shape_cast %124 : vector<8xf32> to vector<8x1xf32>
    %126 = vector.broadcast %125 : vector<8x1xf32> to vector<8x8xf32>
    %127 = arith.divf %123, %126 : vector<8x8xf32>
    %cst_42 = arith.constant dense<0.000000e+00> : vector<8x32xf32>
    %128 = tpu.matmul %127, %114, %cst_42 {dimension_numbers = #tpu.dot_dimension_numbers<[1], [0], [0], [1], [0, 0, 1, 1], [], []>} : vector<8x8xf32>, vector<8x32xf32>, vector<8x32xf32> -> vector<8x32xf32>
    %129 = arith.addf %111, %128 : vector<8x32xf32>
    %130 = vector.extract_strided_slice %88 {offsets = [0, 32], sizes = [8, 16], strides = [1, 1]} : vector<8x256xf32> to vector<8x16xf32>
    %131 = vector.extract_strided_slice %88 {offsets = [0, 96], sizes = [8, 16], strides = [1, 1]} : vector<8x256xf32> to vector<8x16xf32>
    %132 = vector.extract_strided_slice %88 {offsets = [0, 192], sizes = [8, 32], strides = [1, 1]} : vector<8x256xf32> to vector<8x32xf32>
    %cst_43 = arith.constant dense<0.000000e+00> : vector<8x8xf32>
    %133 = tpu.matmul %130, %131, %cst_43 {dimension_numbers = #tpu.dot_dimension_numbers<[1], [1], [0], [0], [0, 0, 1, 0], [], []>} : vector<8x16xf32>, vector<8x16xf32>, vector<8x8xf32> -> vector<8x8xf32>
    %cst_44 = arith.constant 2.500000e-01 : f32
    %134 = vector.broadcast %cst_44 : f32 to vector<8x8xf32>
    %135 = arith.mulf %133, %134 : vector<8x8xf32>
    %136 = arith.addf %135, %92 : vector<8x8xf32>
    %cst_45 = arith.constant dense<0xFF800000> : vector<8xf32>
    %137 = vector.multi_reduction <maximumf>, %136, %cst_45 [1] : vector<8x8xf32> to vector<8xf32>
    %138 = vector.shape_cast %137 : vector<8xf32> to vector<8x1xf32>
    %139 = vector.broadcast %138 : vector<8x1xf32> to vector<8x8xf32>
    %140 = arith.subf %136, %139 : vector<8x8xf32>
    %141 = math.exp %140 : vector<8x8xf32>
    %cst_46 = arith.constant dense<0.000000e+00> : vector<8xf32>
    %142 = vector.multi_reduction <add>, %141, %cst_46 [1] : vector<8x8xf32> to vector<8xf32>
    %143 = vector.shape_cast %142 : vector<8xf32> to vector<8x1xf32>
    %144 = vector.broadcast %143 : vector<8x1xf32> to vector<8x8xf32>
    %145 = arith.divf %141, %144 : vector<8x8xf32>
    %cst_47 = arith.constant dense<0.000000e+00> : vector<8x32xf32>
    %146 = tpu.matmul %145, %132, %cst_47 {dimension_numbers = #tpu.dot_dimension_numbers<[1], [0], [0], [1], [0, 0, 1, 1], [], []>} : vector<8x8xf32>, vector<8x32xf32>, vector<8x32xf32> -> vector<8x32xf32>
    %147 = arith.addf %129, %146 : vector<8x32xf32>
    %148 = vector.extract_strided_slice %88 {offsets = [0, 48], sizes = [8, 16], strides = [1, 1]} : vector<8x256xf32> to vector<8x16xf32>
    %149 = vector.extract_strided_slice %88 {offsets = [0, 112], sizes = [8, 16], strides = [1, 1]} : vector<8x256xf32> to vector<8x16xf32>
    %150 = vector.extract_strided_slice %88 {offsets = [0, 224], sizes = [8, 32], strides = [1, 1]} : vector<8x256xf32> to vector<8x32xf32>
    %cst_48 = arith.constant dense<0.000000e+00> : vector<8x8xf32>
    %151 = tpu.matmul %148, %149, %cst_48 {dimension_numbers = #tpu.dot_dimension_numbers<[1], [1], [0], [0], [0, 0, 1, 0], [], []>} : vector<8x16xf32>, vector<8x16xf32>, vector<8x8xf32> -> vector<8x8xf32>
    %cst_49 = arith.constant 2.500000e-01 : f32
    %152 = vector.broadcast %cst_49 : f32 to vector<8x8xf32>
    %153 = arith.mulf %151, %152 : vector<8x8xf32>
    %154 = arith.addf %153, %92 : vector<8x8xf32>
    %cst_50 = arith.constant dense<0xFF800000> : vector<8xf32>
    %155 = vector.multi_reduction <maximumf>, %154, %cst_50 [1] : vector<8x8xf32> to vector<8xf32>
    %156 = vector.shape_cast %155 : vector<8xf32> to vector<8x1xf32>
    %157 = vector.broadcast %156 : vector<8x1xf32> to vector<8x8xf32>
    %158 = arith.subf %154, %157 : vector<8x8xf32>
    %159 = math.exp %158 : vector<8x8xf32>
    %cst_51 = arith.constant dense<0.000000e+00> : vector<8xf32>
    %160 = vector.multi_reduction <add>, %159, %cst_51 [1] : vector<8x8xf32> to vector<8xf32>
    %161 = vector.shape_cast %160 : vector<8xf32> to vector<8x1xf32>
    %162 = vector.broadcast %161 : vector<8x1xf32> to vector<8x8xf32>
    %163 = arith.divf %159, %162 : vector<8x8xf32>
    %cst_52 = arith.constant dense<0.000000e+00> : vector<8x32xf32>
    %164 = tpu.matmul %163, %150, %cst_52 {dimension_numbers = #tpu.dot_dimension_numbers<[1], [0], [0], [1], [0, 0, 1, 1], [], []>} : vector<8x8xf32>, vector<8x32xf32>, vector<8x32xf32> -> vector<8x32xf32>
    %165 = arith.addf %147, %164 : vector<8x32xf32>
    %c0_53 = arith.constant 0 : index
    %c640 = arith.constant 640 : index
    %166 = vector.load %arg4[%c0_53, %c640] : memref<8x688xf32, #tpu.memory_space<vmem>>, vector<8x32xf32>
    %167 = arith.addf %165, %166 : vector<8x32xf32>
    %168 = arith.addf %167, %86 : vector<8x32xf32>
    %169 = arith.addf %86, %168 : vector<8x32xf32>
    %170 = arith.mulf %51, %169 : vector<8x32xf32>
    %cst_54 = arith.constant 1.000000e+00 : f32
    %171 = vector.broadcast %cst_54 : f32 to vector<8x32xf32>
    %172 = arith.subf %171, %51 : vector<8x32xf32>
    %173 = arith.mulf %172, %5 : vector<8x32xf32>
    %174 = arith.addf %170, %173 : vector<8x32xf32>
    %c0_55 = arith.constant 0 : index
    %c0_56 = arith.constant 0 : index
    %175 = vector.load %arg6[%c0_55, %c0_56] : memref<8x32xf32, #tpu.memory_space<vmem>>, vector<8x32xf32>
    tpu.vector_store %arg6[%c0_55, %c0_56], %174 {strides = array<i32>} : memref<8x32xf32, #tpu.memory_space<vmem>>, vector<8x32xf32>,
    %176 = tpu.concatenate %174, %51 in 1 : vector<8x32xf32>, vector<8x32xf32> -> vector<8x64xf32>
    %c0_57 = arith.constant 0 : index
    %c0_58 = arith.constant 0 : index
    %c0_59 = arith.constant 0 : index
    %177 = vector.load %arg5[%c0_57, %c0_58, %c0_59] : memref<1x8x64xf32, #tpu.memory_space<vmem>>, vector<1x8x64xf32>
    %178 = vector.shape_cast %177 : vector<1x8x64xf32> to vector<8x64xf32>
    %179 = vector.shape_cast %176 : vector<8x64xf32> to vector<1x8x64xf32>
    tpu.vector_store %arg5[%c0_57, %c0_58, %c0_59], %179 {strides = array<i32>} : memref<1x8x64xf32, #tpu.memory_space<vmem>>, vector<1x8x64xf32>,
    return
  }
  func.func @transform_0(%arg0: i32) -> (i32, i32, i32) {
    %c0_i32 = arith.constant 0 : i32
    %c0_i32_0 = arith.constant 0 : i32
    %c0_i32_1 = arith.constant 0 : i32
    return %arg0, %c0_i32, %c0_i32_0 : i32, i32, i32
  }
  func.func @transform_1(%arg0: i32) -> (i32, i32) {
    %c0_i32 = arith.constant 0 : i32
    %c0_i32_0 = arith.constant 0 : i32
    %c0_i32_1 = arith.constant 0 : i32
    return %c0_i32, %c0_i32_0 : i32, i32
  }
  func.func @transform_2(%arg0: i32) -> (i32, i32) {
    %c0_i32 = arith.constant 0 : i32
    %c0_i32_0 = arith.constant 0 : i32
    %c0_i32_1 = arith.constant 0 : i32
    return %c0_i32, %c0_i32_0 : i32, i32
  }
  func.func @transform_3(%arg0: i32) -> (i32, i32) {
    %c0_i32 = arith.constant 0 : i32
    %c0_i32_0 = arith.constant 0 : i32
    %c0_i32_1 = arith.constant 0 : i32
    return %c0_i32, %c0_i32_0 : i32, i32
  }
  func.func @transform_4(%arg0: i32) -> (i32, i32, i32) {
    %c0_i32 = arith.constant 0 : i32
    %c0_i32_0 = arith.constant 0 : i32
    %c0_i32_1 = arith.constant 0 : i32
    return %arg0, %c0_i32, %c0_i32_0 : i32, i32, i32
  }
}

</mosaic_0001>

<bundles_post_ra>
// kernel: tpu_custom_call.1
= control target key start
LH: loop header
LB: loop body
LE: loop exit
PB: predicated region body
PF: predicated region fallthrough
CT: control target
= control target key end

     0   :  { %9 = vsyncpa [#allocation4], 0  ;;  %s1907_s0 = inlined_call_operand.hbm [shape: f32[8,8,32], index: 0, kind: input, shape index: {}]   ;;  %s1908_s1 = inlined_call_operand.hbm [shape: f32[8,32], index: 1, kind: input, shape index: {}]   ;;  %s1909_s2 = inlined_call_operand.hbm [shape: f32[480,256], index: 2, kind: input, shape index: {}]   ;;  %s1910_s3 = inlined_call_operand.hbm [shape: f32[8,688], index: 3, kind: input, shape index: {}]   ;;  %s1911_s4 = inlined_call_operand.hbm [shape: f32[8,8,64], index: 4, kind: output, shape index: {}]  }
   0x1   :  { %11 = vsyncpa [#allocation4 + $0x1], 0 }
   0x2   :  { %12 = vsyncpa [#allocation7], 0 }
   0x3   :  { %13 = vsyncpa [#allocation10], 0 }
   0x4   :  { %14 = vsyncpa [#allocation5], 0 }
   0x5   :  { %16 = vsyncpa [#allocation5 + $0x1], 0  ;;  %s1618_s15 = smov 0   ;;  %s1620_s16 = smov 0  }
   0x6   :  { %s1622_s17 = smov 0   ;;  %s1624_s18 = smov 0  }
   0x7 LB: > { %s1639_s19 = sadd.s32 4294967295, %s1576_s18   ;;  %s1220_s20 = sadd.s32 4294967294, %s1576_s18   ;;  %s1576_s18 = sphi %s1624_s18, %s1922_s18   ;;  %s1572_s17 = sphi %s1622_s17, %s1921_s17   ;;  %s1568_s16 = sphi %s1620_s16, %s1920_s16   ;;  %s1564_s15 = sphi %s1618_s15, %s1919_s15  }
   0x8   : > { %p42_p0 = scmp.ne.s32.totalorder %s1568_s16, %s1564_s15  ;;  %p43_p1 = scmp.eq.s32.totalorder %s1639_s19, 0 }
   0x9   : > { %p129_p2 = scmp.eq.s32.totalorder %s1639_s19, 7  ;;  %p135_p3 = scmp.eq.s32.totalorder %s1220_s20, 7 }
   0xa   : > { %p1648_p4 = por %p43_p1, %p42_p0  ;;  %p1221_p5 = scmp.ge.s32.totalorder %s1576_s18, 1 }
   0xb   : > { %p1653_p6 = por %p135_p3, %p42_p0  ;;  %p142_p7 = scmp.lt.s32.totalorder %s1576_s18, 9 }
   0xc   : > { %s154_s25 = sshll.u32 %s1908_s1, 4  ;;  %s1578_s27 = smov [#allocation6]   ;;  %s155_s25 = int_to_ptr.hbm [resolvable:$true] %s154_s25 }
   0xd   : > { %p1662_p9 = pnand %p1221_p5, %p142_p7  ;;  %s156_s28 = sshll.u32 %s1578_s27, 4  ;;  %s157_s28 = int_to_ptr.vmem [resolvable:$true] %s156_s28 }
   0xe   : > { %s165_s5 = sshll.u32 %s1909_s2, 4  ;;  %s1579_s7 = smov [#allocation8]   ;;  %s166_s5 = int_to_ptr.hbm [resolvable:$true] %s165_s5 }
   0xf   : > { %p1278_p10 = pneg %p1662_p9  ;;  %s167_s8 = sshll.u32 %s1579_s7, 4  ;;  %s168_s8 = int_to_ptr.vmem [resolvable:$true] %s167_s8 }
  0x10   : > { %s1580_s9 = smov 256   ;;  %s1581_s10 = smov 16  }
  0x11   : > { %p1673_p11 = pnand %p1278_p10, %p43_p1  ;;  %s180_s13 = sshll.u32 %s1910_s3, 4  ;;  %s181_s13 = int_to_ptr.hbm [resolvable:$true] %s180_s13 }
  0x12   : > { %s1582_s14 = smov [#allocation9]   ;;  %s1687_s23 = sadd.s32 1, %s1576_s18  }
  0x13   : > { %1281 = dma.hbm_to_vmem [thread:$0]  (!%p1673_p11), %s155_s25, 128, %s157_s28, [#allocation7]  }
  0x14   : > { %1284 = dma.hbm_to_vmem [thread:$0]  (!%p1673_p11), %s166_s5, 15360, %s168_s8, [#allocation7], %s1580_s9, %s1580_s9, %s1581_s10  }
  0x15   : > { %s182_s20 = sshll.u32 %s1582_s14, 4  ;;  %s26_s24 = ssub.s32 %s1576_s18, %s1687_s23  ;;  %s183_s20 = int_to_ptr.vmem [resolvable:$true] %s182_s20 }
  0x16   : > { %1287 = dma.hbm_to_vmem [thread:$0]  (!%p1673_p11), %s181_s13, 768, %s183_s20, [#allocation10]  }
  0x17   : > { %s29_s25 = sadd.s32 1, %s1572_s17  ;;  %p27_p12 = scmp.eq.s32.totalorder %s26_s24, 0 }
  0x18   : > { %p36_p13 = scmp.ne.s32.totalorder %s1572_s17, %s1568_s16  ;;  %p37_p0 = scmp.eq.s32.totalorder %s1576_s18, 0 }
  0x19   : > { %s1696_s27 = scalar_select %p27_p12, %s1572_s17, %s29_s25  }
  0x1a   : > { %p1700_p3 = por %p129_p2, %p36_p13  ;;  %p1299_p5 = scmp.lt.s32.totalorder %s1576_s18, 8 }
  0x1b   : > { %s193_s29 = sand.u32 1, %s1572_s17   ;;  %s1227_s30 = sshll.u32 %s1576_s18, 3 }
  0x1c   : > { %p38_p7 = por %p37_p0, %p36_p13  ;;  %s1226_s5 = sshll.u32 %s193_s29, 3 }
  0x1d   : > { %s201_s8 = scalar_lea.hbm %s1907_s0, %s1227_s30  ;;  %s197_s10 = scalar_lea.vmem [#allocation3], %s1226_s5 }
  0x1e   : > { %s203_s9 = sshll.u32 %s201_s8, 4  ;;  %s205_s11 = sshll.u32 %s197_s10, 4  ;;  %s204_s9 = int_to_ptr.hbm [resolvable:$true] %s203_s9  ;;  %s206_s11 = int_to_ptr.vmem [resolvable:$true] %s205_s11 }
  0x1f   : > { %p1710_p10 = pnand %p1299_p5, %p38_p7  ;;  %s194_s13 = scalar_lea.sflag [#allocation4], %s193_s29 }
  0x20   : > { %s1472_s14 = sshra.s32 %s204_s9, 4  ;;  %s1479_s30 = scalar_lea.hbm %s1907_s0, 64  ;;  %s1473_s14 = int_to_ptr.hbm [resolvable:$true] %s1472_s14 }
  0x21   : > { %s1474_s20 = scalar_lea.hbm %s1473_s14, 8  ;;  %p1476_p11 = pneg %p1710_p10 }
  0x22   : > { %p1475_p2 = scmp.ne.s32.totalorder %s1473_s14, %s1474_s20  ;;  %p1480_p0 = scmp.lt.s32.totalorder %s1473_s14, %s1907_s0 }
  0x23   : > { %p1481_p5 = scmp.lt.s32.totalorder %s1479_s30, %s1474_s20 }
  0x24   : > { %p1477_p12 = pnand %p1476_p11, %p1475_p2 }
  0x25   : > { %p1482_p7 = por %p1481_p5, %p1480_p0 }
  0x26   : > { %p1478_p13 = pneg %p1477_p12 }
  0x28   : > { %p1483_p8 = pnand %p1482_p7, %p1478_p13 }
  0x2a   : > { %1486 = shalt.err (!%p1483_p8)
}
  0x2b   : > { %1291 = dma.hbm_to_vmem [thread:$0]  (!%p1710_p10), %s204_s9, 128, %s206_s11, %s194_s13  }
  0x2c   : > { %214 = sbr.rel (%p1662_p9) target bundleno = 2851 (0xb23), region = 36  ;;  %s1727_s29 = sand.u32 (!%p1662_p9), 1, %s1568_s16  }
  0x2d   : > { %s1229_s7 = sshll.u32 (!%p1662_p9), %s1727_s29, 3  ;;  %s217_s8 = scalar_lea.sflag (!%p1662_p9), [#allocation4], %s1727_s29 }
  0x2e   : > { %s220_s10 = scalar_lea.vmem (!%p1662_p9), [#allocation3], %s1229_s7 }
  0x31   : > { %1547 = dma.done.wait (%p1648_p4), %s217_s8, 128  }
  0x32   : > { %1549 = vsyncadd (%p1648_p4), %s217_s8, 4294967168 }
  0x33   : > { %1551 = dma.done.wait (%p43_p1), [#allocation7], 15488  }
  0x34   : > { %1553 = vsyncadd (%p43_p1), [#allocation7], 4294951808 }
  0x35   : > { %1555 = dma.done.wait (%p43_p1), [#allocation10], 768  }
  0x36   : > { %1557 = vsyncadd (%p43_p1), [#allocation10], 4294966528  ;;  %s1743_s26 = scalar_lea.vmem [#allocation11], %s1229_s7  ;;  %p1918_p8 = scmp.ne.s32.totalorder %s1639_s19, 0 }
  0x38   : > { %264 = sbr.rel (%p1918_p8) target bundleno = 63 (0x3f), region = 56 }
  0x3d   : > { %v265_v0 = vld [vmem:[#allocation6] sm:$0xff]  ;;  %vm266_vm0 = vcmask 261120  }
  0x3e   : > { %267 = vst.msk [vmem:[#allocation2] sm:$0xff] %vm266_vm0, %v265_v0 }
  0x3f PF: > { %v268_v1 = vld [vmem:[%s220_s10] sm:$0xff]  ;;  %v283_v3 = vld [vmem:[#allocation8 + $0x60] sm:$0xff]  ;;  %s1583_s21 = smov 32   ;;  %vm275_vm1 = vcmask 261120   ;;  %vm285_vm2 = vcmask 523264   ;;  %s1584_s9 = smov 96  }
  0x40   : > { %v284_v2 = vld [vmem:[#allocation8 + $0x70] sm:$0xff]  ;;  %272 = vrot.lane.b32.xlu0 %v268_v1, %s1583_s21  ;;  %v281_v5 = vld [vmem:[#allocation8 + $0x40] sm:$0xff]  ;;  %s1585_s11 = smov 64   ;;  %vm341_vm3 = vcmask 7168   ;;  %v1586_v26 = vmov 1.0   ;;  %v451_v34 = vld [vmem:[#allocation8 + $0x178] sm:$0xff] }
  0x41   : > { %297 = vmatpush.msra.mxu0 %v284_v2  ;;  %v282_v4 = vld [vmem:[#allocation8 + $0x50] sm:$0xff]  ;;  %v279_v7 = vld [vmem:[#allocation8 + $0x20] sm:$0xff]  ;;  %v449_v37 = vld [vmem:[#allocation8 + $0x168] sm:$0xff]  ;;  %vm415_vm8 = vcmask 785408   ;;  %s1587_s12 = smov 112   ;;  %s1588_s13 = smov 48  }
  0x42   : > { %v280_v6 = vld [vmem:[#allocation8 + $0x30] sm:$0xff]  ;;  %v277_v9 = vld [vmem:[#allocation8] sm:$0xff]  ;;  %v447_v40 = vld [vmem:[#allocation8 + $0x158] sm:$0xff]  ;;  %s1589_s14 = smov 16   ;;  %s1590_s20 = smov 80  }
  0x43   : > { %298 = vmatpush.msra.mxu0 %v283_v3  ;;  %v278_v8 = vld [vmem:[#allocation8 + $0x10] sm:$0xff]  ;;  %v448_v23 = vld [vmem:[#allocation8 + $0x160] sm:$0xff]  ;;  %v445_v44 = vld [vmem:[#allocation8 + $0x148] sm:$0xff]  ;;  %s1591_s24 = smov 88   ;;  %s1259_s25 = sshll.u32 %s1639_s19, 3 }
  0x44   : > { %v450_v21 = vld [vmem:[#allocation8 + $0x170] sm:$0xff]  ;;  %v480_v24 = vld [vmem:[#allocation8 + $0x260] sm:$0xff]  ;;  %v443_v48 = vld [vmem:[#allocation8 + $0x138] sm:$0xff]  ;;  %s1116_s6 = scalar_lea.hbm %s1911_s4, %s1259_s25  ;;  %s1118_s7 = sshll.u32 %s1743_s26, 4  ;;  %s1119_s7 = int_to_ptr.vmem [resolvable:$true] %s1118_s7 }
  0x45   : > { %299 = vmatpush.msra.mxu0 %v282_v4  ;;  %v1748_v10 = vld [vmem:[#allocation2] sm:$0xff]  ;;  %v482_v22 = vld [vmem:[#allocation8 + $0x270] sm:$0xff]  ;;  %517 = vmatpush.msra.mxu2 %v450_v21  ;;  %s1120_s8 = sshll.u32 %s1116_s6, 4  ;;  %s1106_s10 = scalar_lea.sflag [#allocation5], %s1727_s29  ;;  %s1121_s8 = int_to_ptr.hbm [resolvable:$true] %s1120_s8 }
  0x46   : > { %403 = vrot.lane.b32.xlu2 %v1748_v10, %s1583_s21  ;;  %537 = vmatpush.msra.mxu3 %v482_v22  ;;  %v446_v25 = vld [vmem:[#allocation8 + $0x150] sm:$0xff]  ;;  %v444_v28 = vld [vmem:[#allocation8 + $0x140] sm:$0xff]  ;;  %v439_v22 = vld [vmem:[#allocation8 + $0x118] sm:$0xff] }
  0x47   : > { %300 = vmatpush.msra.mxu0 %v281_v5  ;;  %518 = vmatpush.msra.mxu2 %v448_v23  ;;  %v478_v27 = vld [vmem:[#allocation8 + $0x250] sm:$0xff]  ;;  %v476_v29 = vld [vmem:[#allocation8 + $0x240] sm:$0xff]  ;;  %v479_v23 = vld [vmem:[#allocation8 + $0x258] sm:$0xff] }
  0x48   : > { %538 = vmatpush.msra.mxu3 %v480_v24  ;;  %v442_v30 = vld [vmem:[#allocation8 + $0x130] sm:$0xff]  ;;  %v440_v33 = vld [vmem:[#allocation8 + $0x120] sm:$0xff]  ;;  %v511_v24 = vld [vmem:[#allocation8 + $0x358] sm:$0xff] }
  0x49   : > { %301 = vmatpush.msra.mxu0 %v280_v6  ;;  %519 = vmatpush.msra.mxu2 %v446_v25  ;;  %v474_v31 = vld [vmem:[#allocation8 + $0x230] sm:$0xff]  ;;  %v472_v36 = vld [vmem:[#allocation8 + $0x220] sm:$0xff] }
  0x4a   : > { %539 = vmatpush.msra.mxu3 %v478_v27  ;;  %v438_v38 = vld [vmem:[#allocation8 + $0x110] sm:$0xff]  ;;  %v512_v42 = vld [vmem:[#allocation8 + $0x360] sm:$0xff]  ;;  %v477_v27 = vld [vmem:[#allocation8 + $0x248] sm:$0xff] }
  0x4b   : > { %302 = vmatpush.msra.mxu0 %v279_v7  ;;  %520 = vmatpush.msra.mxu2 %v444_v28  ;;  %v514_v39 = vld [vmem:[#allocation8 + $0x370] sm:$0xff]  ;;  %v436_v43 = vld [vmem:[#allocation8 + $0x100] sm:$0xff]  ;;  %v509_v28 = vld [vmem:[#allocation8 + $0x348] sm:$0xff] }
  0x4c   : > { %540 = vmatpush.msra.mxu3 %v476_v29  ;;  %v470_v41 = vld [vmem:[#allocation8 + $0x210] sm:$0xff]  ;;  %v468_v45 = vld [vmem:[#allocation8 + $0x200] sm:$0xff] }
  0x4d   : > { %303 = vmatpush.msra.mxu0 %v278_v8  ;;  %521 = vmatpush.msra.mxu2 %v442_v30  ;;  %v510_v46 = vld [vmem:[#allocation8 + $0x350] sm:$0xff]  ;;  %v432_v50 = vld [vmem:[#allocation8 + $0xe0] sm:$0xff]  ;;  %v435_v30 = vld [vmem:[#allocation8 + $0xf8] sm:$0xff] }
  0x4e   : > { %406 = vrot.lane.b32.xlu2 %v1748_v10, %s1585_s11  ;;  %541 = vmatpush.msra.mxu3 %v474_v31  ;;  %v434_v47 = vld [vmem:[#allocation8 + $0xf0] sm:$0xff]  ;;  %v464_v52 = vld [vmem:[#allocation8 + $0x1e0] sm:$0xff]  ;;  %v475_v31 = vld [vmem:[#allocation8 + $0x238] sm:$0xff] }
  0x4f   : > { %304 = vmatpush.msra.mxu0 %v277_v9  ;;  %522 = vmatpush.msra.mxu2 %v440_v33  ;;  %v466_v49 = vld [vmem:[#allocation8 + $0x1f0] sm:$0xff]  ;;  %v428_v57 = vld [vmem:[#allocation8 + $0xc0] sm:$0xff] }
  0x50   : > { %542 = vmatpush.msra.mxu3 %v472_v36  ;;  %v430_v54 = vld [vmem:[#allocation8 + $0xd0] sm:$0xff]  ;;  %v460_v59 = vld [vmem:[#allocation8 + $0x1c0] sm:$0xff]  ;;  %v505_v36 = vld [vmem:[#allocation8 + $0x328] sm:$0xff] }
  0x51   : > { %577 = vmatpush.msrb.mxu0 %v451_v34  ;;  %523 = vmatpush.msra.mxu2 %v438_v38  ;;  %v462_v55 = vld [vmem:[#allocation8 + $0x1d0] sm:$0xff]  ;;  %v424_v1 = vld [vmem:[#allocation8 + $0xa0] sm:$0xff]  ;;  %v433_v34 = vld [vmem:[#allocation8 + $0xe8] sm:$0xff] }
  0x52   : > { %543 = vmatpush.msra.mxu3 %v470_v41  ;;  %v426_v62 = vld [vmem:[#allocation8 + $0xb0] sm:$0xff]  ;;  %v456_v3 = vld [vmem:[#allocation8 + $0x1a0] sm:$0xff]  ;;  %v431_v38 = vld [vmem:[#allocation8 + $0xd8] sm:$0xff] }
  0x53   : > { %578 = vmatpush.msrb.mxu0 %v449_v37  ;;  %524 = vmatpush.msra.mxu2 %v436_v43  ;;  %v458_v63 = vld [vmem:[#allocation8 + $0x1b0] sm:$0xff]  ;;  %v1775_v7 = vld [vmem:[#allocation9 + $0x20] sm:$0xff]  ;;  %v429_v43 = vld [vmem:[#allocation8 + $0xc8] sm:$0xff] }
  0x54   : > { %544 = vmatpush.msra.mxu3 %v468_v45  ;;  %v422_v5 = vld [vmem:[#allocation8 + $0x90] sm:$0xff]  ;;  %v504_v25 = vld [vmem:[#allocation8 + $0x320] sm:$0xff]  ;;  %v501_v45 = vld [vmem:[#allocation8 + $0x308] sm:$0xff] }
  0x55   : > { %579 = vmatpush.msrb.mxu0 %v447_v40  ;;  %525 = vmatpush.msra.mxu2 %v434_v47  ;;  %v454_v8 = vld [vmem:[#allocation8 + $0x190] sm:$0xff]  ;;  %v500_v33 = vld [vmem:[#allocation8 + $0x300] sm:$0xff]  ;;  %v503_v40 = vld [vmem:[#allocation8 + $0x318] sm:$0xff] }
  0x56   : > { %545 = vmatpush.msra.mxu3 %v466_v49  ;;  %v506_v21 = vld [vmem:[#allocation8 + $0x330] sm:$0xff]  ;;  %v427_v47 = vld [vmem:[#allocation8 + $0xb8] sm:$0xff] }
  0x57   : > { %580 = vmatpush.msrb.mxu0 %v445_v44  ;;  %526 = vmatpush.msra.mxu2 %v432_v50  ;;  %v502_v29 = vld [vmem:[#allocation8 + $0x310] sm:$0xff]  ;;  %v469_v44 = vld [vmem:[#allocation8 + $0x208] sm:$0xff]  ;;  %v499_v49 = vld [vmem:[#allocation8 + $0x2f8] sm:$0xff] }
  0x58   : > { %546 = vmatpush.msra.mxu3 %v464_v52  ;;  %v498_v37 = vld [vmem:[#allocation8 + $0x2f0] sm:$0xff]  ;;  %v492_v50 = vld [vmem:[#allocation8 + $0x2c0] sm:$0xff]  ;;  %v465_v52 = vld [vmem:[#allocation8 + $0x1e8] sm:$0xff] }
  0x59   : > { %581 = vmatpush.msrb.mxu0 %v443_v48  ;;  %527 = vmatpush.msra.mxu2 %v430_v54  ;;  %v467_v48 = vld [vmem:[#allocation8 + $0x1f8] sm:$0xff] }
  0x5a   : > { %547 = vmatpush.msra.mxu3 %v462_v55  ;;  %v490_v55 = vld [vmem:[#allocation8 + $0x2b0] sm:$0xff] }
  0x5b   : > { %528 = vmatpush.msra.mxu2 %v428_v57  ;;  %v463_v57 = vld [vmem:[#allocation8 + $0x1d8] sm:$0xff] }
  0x5c   : > { %548 = vmatpush.msra.mxu3 %v460_v59 }
  0x5d   : > { %529 = vmatpush.msra.mxu2 %v426_v62  ;;  %v461_v62 = vld [vmem:[#allocation8 + $0x1c8] sm:$0xff] }
  0x5e   : > { %549 = vmatpush.msra.mxu3 %v458_v63 }
  0x5f   : > { %530 = vmatpush.msra.mxu2 %v424_v1  ;;  %v397_v1 = vld [vmem:[#allocation9 + $0x10] sm:$0xff] }
  0x60   : > { %550 = vmatpush.msra.mxu3 %v456_v3  ;;  %v486_v3 = vld [vmem:[#allocation8 + $0x290] sm:$0xff] }
  0x61   : > { %531 = vmatpush.msra.mxu2 %v422_v5  ;;  %v459_v5 = vld [vmem:[#allocation8 + $0x1b8] sm:$0xff] }
  0x62   : > { %551 = vmatpush.msra.mxu3 %v454_v8  ;;  %v484_v8 = vld [vmem:[#allocation8 + $0x280] sm:$0xff] }
  0xa0   : > { %v1783_v41 = vpop.permute.xlu2 %403 }
  0xa1   : > { %v413_v54 = vsel %vm275_vm1, %v1748_v10, %v1783_v41 }
  0xa8   : > { %v407_v59 = vpop.permute.xlu2 %406 }
  0xb2   : > { %v273_v11 = vpop.permute.xlu0 %272 }
  0xb3   : > { %v276_v12 = vsel %vm275_vm1, %v1748_v10, %v273_v11  ;;  %v420_v11 = vld [vmem:[#allocation8 + $0x80] sm:$0xff] }
  0xb4   : > { %1235 = vmatmul.msk.f32.vlgmr.msra.gmra.mxu0 %vm285_vm2, %v276_v12  ;;  %v452_v12 = vld [vmem:[#allocation8 + $0x180] sm:$0xff]  ;;  %532 = vmatpush.msra.mxu2 %v420_v11  ;;  %v489_v11 = vld [vmem:[#allocation8 + $0x2a8] sm:$0xff] }
  0xb5   : > { %552 = vmatpush.msra.mxu3 %v452_v12  ;;  %v455_v12 = vld [vmem:[#allocation8 + $0x198] sm:$0xff] }
 0x131   : > { %v1755_v13 = vpop.f32.mrf.mxu0 }
 0x132   : > { %310 = vrot.lane.b32.xlu0 %v1755_v13, %s1584_s9 }
 0x13a   : > { %409 = vrot.lane.b32.xlu0 %v1748_v10, %s1584_s9  ;;  %v493_v10 = vld [vmem:[#allocation8 + $0x2c8] sm:$0xff] }
 0x1a4   : > { %v311_v14 = vpop.permute.xlu0 %310 }
 0x1a5   : > { %v313_v15 = vmul.f32 %v311_v14, %v1755_v13 }
 0x1a7   : > { %v314_v16 = vsel %vm275_vm1, %v313_v15, 0.0  ;;  %v483_v15 = vld [vmem:[#allocation8 + $0x278] sm:$0xff] }
 0x1a8   : > { %315 = vadd.xlane.f32.xlu1 %v314_v16  ;;  %v515_v16 = vld [vmem:[#allocation8 + $0x378] sm:$0xff]  ;;  %597 = vmatpush.msrb.mxu2 %v483_v15 }
 0x1a9   : > { %617 = vmatpush.msrb.mxu3 %v515_v16  ;;  %v487_v15 = vld [vmem:[#allocation8 + $0x298] sm:$0xff]  ;;  %v453_v16 = vld [vmem:[#allocation8 + $0x188] sm:$0xff] }
 0x1ac   : > { %v410_v63 = vpop.permute.xlu0 %409 }
 0x21b   : > { %v316_v17 = vpop.xlane.xlu1 %315 }
 0x21c   : > { %v1765_v18 = vmul.f32 0.17677669, %v316_v17  ;;  %v1236_v19 = vmul.f32 -0.17677669, %v316_v17  ;;  %v508_v17 = vld [vmem:[#allocation8 + $0x340] sm:$0xff] }
 0x21e   : > { %v320_v20 = vmul.f32 1.442695, %v1236_v19  ;;  %1237 = vmatpush.xpose.msk.msra.mxu1 %vm341_vm3, %v1765_v18  ;;  %v481_v19 = vld [vmem:[#allocation8 + $0x268] sm:$0xff] }
 0x21f   : > { %598 = vmatpush.msrb.mxu2 %v481_v19  ;;  %v396_v19 = vld [vmem:[#allocation9 + $0x8] sm:$0xff] }
 0x220   : > { %1351 = vpow2.f32 %v320_v20  ;;  %v513_v20 = vld [vmem:[#allocation8 + $0x368] sm:$0xff] }
 0x221   : > { %1238 = vmatmul.msk.f32.vlgmr.msra.gmra.mxu1 %vm341_vm3, %v1586_v26  ;;  %618 = vmatpush.msrb.mxu3 %v513_v20  ;;  %v437_v26 = vld [vmem:[#allocation8 + $0x108] sm:$0xff]  ;;  %vm761_vm3 = vcmask 130048  }
 0x222   : > { %557 = vmatpush.msrb.mxu1 %v514_v39  ;;  %599 = vmatpush.msrb.mxu2 %v479_v23  ;;  %v471_v39 = vld [vmem:[#allocation8 + $0x218] sm:$0xff] }
 0x223   : > { %619 = vmatpush.msrb.mxu3 %v511_v24 }
 0x224   : > { %558 = vmatpush.msrb.mxu1 %v512_v42  ;;  %600 = vmatpush.msrb.mxu2 %v477_v27  ;;  %v496_v42 = vld [vmem:[#allocation8 + $0x2e0] sm:$0xff] }
 0x225   : > { %620 = vmatpush.msrb.mxu3 %v509_v28 }
 0x226   : > { %v1352_v32 = vpop.eup %1351  ;;  %559 = vmatpush.msrb.mxu1 %v510_v46  ;;  %601 = vmatpush.msrb.mxu2 %v475_v31  ;;  %v494_v46 = vld [vmem:[#allocation8 + $0x2d0] sm:$0xff] }
 0x227   : > { %v1768_v35 = vadd.f32 1.0, %v1352_v32  ;;  %v507_v32 = vld [vmem:[#allocation8 + $0x338] sm:$0xff] }
 0x228   : > { %560 = vmatpush.msrb.mxu1 %v508_v17  ;;  %621 = vmatpush.msrb.mxu3 %v507_v32  ;;  %v485_v17 = vld [vmem:[#allocation8 + $0x288] sm:$0xff] }
 0x229   : > { %1353 = vrcp.f32 %v1768_v35  ;;  %v334_v58 = vand.u32 2147483648, %v1768_v35  ;;  %v332_v61 = vand.u32 2147483647, %v1768_v35  ;;  %vm328_vm5 = vweird.f32 %v1768_v35 }
 0x22a   : > { %561 = vmatpush.msrb.mxu1 %v506_v21  ;;  %622 = vmatpush.msrb.mxu3 %v505_v36 }
 0x22b   : > { %v335_v2 = vor.u32 1.1754944e-38, %v334_v58  ;;  %vm333_vm7 = vcmp.eq.f32.partialorder %v332_v61, 8.507059e+37  ;;  %v495_v58 = vld [vmem:[#allocation8 + $0x2d8] sm:$0xff]  ;;  %v421_v61 = vld [vmem:[#allocation8 + $0x88] sm:$0xff] }
 0x22c   : > { %562 = vmatpush.msrb.mxu1 %v504_v25  ;;  %623 = vmatpush.msrb.mxu3 %v503_v40  ;;  %v516_v25 = vld [vmem:[#allocation9 + $0x18] sm:$0xff] }
 0x22e   : > { %563 = vmatpush.msrb.mxu1 %v502_v29  ;;  %624 = vmatpush.msrb.mxu3 %v501_v45 }
 0x22f   : > { %v1354_v51 = vpop.eup %1353 }
 0x230   : > { %v324_v53 = vmul.f32 %v1354_v51, %v1768_v35  ;;  %vm329_vm4 = vweird.f32 %v1354_v51  ;;  %v473_v35 = vld [vmem:[#allocation8 + $0x228] sm:$0xff]  ;;  %564 = vmatpush.msrb.mxu1 %v500_v33  ;;  %625 = vmatpush.msrb.mxu3 %v499_v49 }
 0x231   : > { %vm330_vm6 = vmor %vm328_vm5, %vm329_vm4  ;;  %602 = vmatpush.msrb.mxu2 %v473_v35  ;;  %vm389_vm4 = vcmask 64512  }
 0x232   : > { %v325_v56 = vsub.f32 1.0, %v324_v53  ;;  %565 = vmatpush.msrb.mxu1 %v498_v37  ;;  %v497_v53 = vld [vmem:[#allocation8 + $0x2e8] sm:$0xff] }
 0x233   : > { %603 = vmatpush.msrb.mxu2 %v471_v39  ;;  %626 = vmatpush.msrb.mxu3 %v497_v53 }
 0x234   : > { %v326_v60 = vmul.f32 %v1354_v51, %v325_v56  ;;  %566 = vmatpush.msrb.mxu1 %v496_v42  ;;  %v423_v56 = vld [vmem:[#allocation8 + $0x98] sm:$0xff] }
 0x235   : > { %604 = vmatpush.msrb.mxu2 %v469_v44  ;;  %627 = vmatpush.msrb.mxu3 %v495_v58 }
 0x236   : > { %v327_v0 = vadd.f32 %v1354_v51, %v326_v60  ;;  %567 = vmatpush.msrb.mxu1 %v494_v46  ;;  %v488_v60 = vld [vmem:[#allocation8 + $0x2a0] sm:$0xff] }
 0x237   : > { %605 = vmatpush.msrb.mxu2 %v467_v48  ;;  %628 = vmatpush.msrb.mxu3 %v493_v10  ;;  %v705_v10 = vld [vmem:[#allocation8 + $0x390] sm:$0xff] }
 0x238   : > { %v331_v4 = vsel %vm330_vm6, %v1354_v51, %v327_v0  ;;  %v425_v51 = vld [vmem:[#allocation8 + $0xa8] sm:$0xff]  ;;  %568 = vmatpush.msrb.mxu1 %v492_v50  ;;  %v414_v0 = vsel %vm285_vm2, %v413_v54, %v407_v59 }
 0x239   : > { %v336_v6 = vsel %vm333_vm7, %v335_v2, %v331_v4  ;;  %606 = vmatpush.msrb.mxu2 %v465_v52  ;;  %v416_v2 = vsel %vm415_vm8, %v414_v0, %v410_v63  ;;  %v707_v63 = vld [vmem:[#allocation8 + $0x3a0] sm:$0xff] }
 0x23a   : > { %v338_v9 = vmul.f32 %v336_v6, %v1755_v13  ;;  %v441_v13 = vld [vmem:[#allocation8 + $0x128] sm:$0xff]  ;;  %569 = vmatpush.msrb.mxu1 %v490_v55  ;;  %v419_v4 = vmul.f32 %v416_v2, %v397_v1  ;;  %v491_v6 = vld [vmem:[#allocation8 + $0x2b8] sm:$0xff]  ;;  %v703_v2 = vld [vmem:[#allocation8 + $0x380] sm:$0xff] }
 0x23b   : > { %582 = vmatpush.msrb.mxu0 %v441_v13  ;;  %607 = vmatpush.msrb.mxu2 %v463_v57  ;;  %v395_v13 = vld [vmem:[#allocation9] sm:$0xff] }
 0x23c   : > { %v1779_v14 = vadd.f32 %v1775_v7, %v338_v9  ;;  %570 = vmatpush.msrb.mxu1 %v488_v60  ;;  %629 = vmatpush.msrb.mxu3 %v491_v6  ;;  %v457_v9 = vld [vmem:[#allocation8 + $0x1a8] sm:$0xff] }
 0x23d   : > { %583 = vmatpush.msrb.mxu0 %v439_v22  ;;  %608 = vmatpush.msrb.mxu2 %v461_v62  ;;  %v709_v62 = vld [vmem:[#allocation8 + $0x3b0] sm:$0xff] }
 0x23e   : > { %399 = vrot.lane.b32.xlu1 %v1779_v14, %s1585_s11  ;;  %571 = vmatpush.msrb.mxu1 %v486_v3 }
 0x23f   : > { %584 = vmatpush.msrb.mxu0 %v437_v26  ;;  %609 = vmatpush.msrb.mxu2 %v459_v5 }
 0x240   : > { %572 = vmatpush.msrb.mxu1 %v484_v8  ;;  %630 = vmatpush.msrb.mxu3 %v489_v11 }
 0x241   : > { %585 = vmatpush.msrb.mxu0 %v435_v30  ;;  %573 = vmatmul.f32.vlgmr.msrb.gmra.mxu1 %v419_v4 }
 0x242   : > { %610 = vmatpush.msrb.mxu2 %v457_v9  ;;  %631 = vmatpush.msrb.mxu3 %v487_v15 }
 0x243   : > { %586 = vmatpush.msrb.mxu0 %v433_v34  ;;  %728 = vmatpush.msra.mxu1 %v709_v62 }
 0x244   : > { %611 = vmatpush.msrb.mxu2 %v455_v12  ;;  %632 = vmatpush.msrb.mxu3 %v485_v17 }
 0x245   : > { %587 = vmatpush.msrb.mxu0 %v431_v38  ;;  %729 = vmatpush.msra.mxu1 %v707_v63 }
 0x246   : > { %612 = vmatpush.msrb.mxu2 %v453_v16 }
 0x247   : > { %588 = vmatpush.msrb.mxu0 %v429_v43  ;;  %730 = vmatpush.msra.mxu1 %v705_v10 }
 0x249   : > { %589 = vmatpush.msrb.mxu0 %v427_v47  ;;  %731 = vmatpush.msra.mxu1 %v703_v2 }
 0x24b   : > { %590 = vmatpush.msrb.mxu0 %v425_v51 }
 0x24d   : > { %591 = vmatpush.msrb.mxu0 %v423_v56 }
 0x24f   : > { %592 = vmatpush.msrb.mxu0 %v421_v61 }
 0x29e   : > { %v1791_v24 = vpop.f32.mrf.mxu1 }
 0x2b0   : > { %v400_v20 = vpop.permute.xlu1 %399 }
 0x2b1   : > { %v412_v21 = vsel %vm285_vm2, %v400_v20, %v1779_v14  ;;  %v710_v20 = vld [vmem:[#allocation8 + $0x3b8] sm:$0xff] }
 0x2b2   : > { %v417_v22 = vmul.f32 %v412_v21, %v395_v13  ;;  %v418_v23 = vmul.f32 %v412_v21, %v396_v19  ;;  %v708_v21 = vld [vmem:[#allocation8 + $0x3a8] sm:$0xff]  ;;  %748 = vmatpush.msrb.mxu1 %v710_v20 }
 0x2b4   : > { %533 = vmatmul.f32.vlgmr.msra.gmra.mxu2 %v417_v22  ;;  %553 = vmatmul.f32.vlgmr.msra.gmra.mxu3 %v418_v23 }
 0x2b5   : > { %593 = vmatmul.f32.vlgmr.msrb.gmra.mxu0 %v417_v22  ;;  %v706_v22 = vld [vmem:[#allocation8 + $0x398] sm:$0xff]  ;;  %749 = vmatpush.msrb.mxu1 %v708_v21 }
 0x2b7   : > { %750 = vmatpush.msrb.mxu1 %v706_v22 }
 0x2bc   : > { %613 = vmatmul.f32.vlgmr.msrb.gmra.mxu2 %v418_v23  ;;  %633 = vmatmul.f32.vlgmr.msrb.gmra.mxu3 %v419_v4  ;;  %v704_v23 = vld [vmem:[#allocation8 + $0x388] sm:$0xff] }
 0x2bd   : > { %751 = vmatpush.msrb.mxu1 %v704_v23 }
 0x2be   : > { %v574_v31 = vpop.f32.mrf.mxu1 }
 0x332   : > { %v594_v30 = vpop.f32.mrf.mxu0 }
 0x333   : > { %v595_v33 = vadd.f32 %v594_v30, %v1775_v7 }
 0x337   : > { %v534_v26 = vpop.f32.mrf.mxu2  ;;  %v554_v27 = vpop.f32.mrf.mxu3 }
 0x338   : > { %v535_v28 = vadd.f32 %v534_v26, %v516_v25  ;;  %v1804_v25 = vld [vmem:[#allocation9 + $0x28] sm:$0xff] }
 0x339   : > { %v1245_v26 = vadd.f32 -1.0, %v1804_v25 }
 0x33a   : > { %v555_v29 = vadd.f32 %v554_v27, %v535_v28 }
 0x33b   : > { %v757_v27 = vmul.f32 1e+30, %v1245_v26 }
 0x33c   : > { %v575_v32 = vadd.f32 %v574_v31, %v555_v29 }
 0x33e   : > { %638 = vrot.lane.b32.xlu2 %v575_v32, %s1583_s21 }
 0x33f   : > { %v614_v14 = vpop.f32.mrf.mxu2  ;;  %v634_v35 = vpop.f32.mrf.mxu3 }
 0x340   : > { %v615_v34 = vadd.f32 %v614_v14, %v595_v33 }
 0x342   : > { %v635_v36 = vadd.f32 %v634_v35, %v615_v34 }
 0x344   : > { %685 = vrot.lane.b32.xlu0 %v635_v36, %s1584_s9 }
 0x34c   : > { %662 = vrot.lane.b32.xlu0 %v635_v36, %s1583_s21 }
 0x398   : > { %v639_v37 = vpop.permute.xlu2 %638 }
 0x399   : > { %v641_v38 = vadd.f32 %v639_v37, %v575_v32 }
 0x39b   : > { %v1241_v39 = vmul.f32 -1.442695, %v641_v38 }
 0x39d   : > { %1355 = vpow2.f32 %v1241_v39 }
 0x3a3   : > { %v1356_v40 = vpop.eup %1355 }
 0x3a4   : > { %v645_v42 = vadd.f32 1.0, %v1356_v40 }
 0x3a6   : > { %1357 = vrcp.f32 %v645_v42  ;;  %v657_v45 = vand.u32 2147483648, %v645_v42  ;;  %v655_v47 = vand.u32 2147483647, %v645_v42  ;;  %vm651_vm10 = vweird.f32 %v645_v42 }
 0x3a8   : > { %v658_v49 = vor.u32 1.1754944e-38, %v657_v45  ;;  %vm656_vm12 = vcmp.eq.f32.partialorder %v655_v47, 8.507059e+37 }
 0x3ac   : > { %v1358_v43 = vpop.eup %1357 }
 0x3ad   : > { %v647_v44 = vmul.f32 %v1358_v43, %v645_v42  ;;  %vm652_vm9 = vweird.f32 %v1358_v43 }
 0x3ae   : > { %vm653_vm11 = vmor %vm651_vm10, %vm652_vm9 }
 0x3af   : > { %v648_v7 = vsub.f32 1.0, %v647_v44 }
 0x3b1   : > { %v649_v46 = vmul.f32 %v1358_v43, %v648_v7 }
 0x3b3   : > { %v650_v48 = vadd.f32 %v1358_v43, %v649_v46 }
 0x3b5   : > { %v654_v50 = vsel %vm653_vm11, %v1358_v43, %v650_v48 }
 0x3b6   : > { %v686_v51 = vpop.permute.xlu0 %685  ;;  %v659_v52 = vsel %vm656_vm12, %v658_v49, %v654_v50 }
 0x3b7   : > { %v688_v53 = vmul.f32 %v686_v51, %v659_v52 }
 0x3b9   : > { %690 = vrot.lane.b32.xlu2 %v688_v53, %s1585_s11 }
 0x3be   : > { %v663_v57 = vpop.permute.xlu0 %662 }
 0x3bf   : > { %v665_v58 = vadd.f32 %v663_v57, %v575_v32 }
 0x3c1   : > { %v1242_v59 = vmul.f32 -1.442695, %v665_v58 }
 0x413   : > { %v691_v54 = vpop.permute.xlu2 %690 }
 0x414   : > { %v693_v55 = vadd.f32 %v691_v54, %v575_v32 }
 0x416   : > { %1359 = vtanh.f32 %v693_v55 }
 0x417   : > { %1361 = vpow2.f32 %v1242_v59 }
 0x41c   : > { %v1360_v56 = vpop.eup %1359 }
 0x41d   : > { %697 = vrot.lane.b32.xlu2 %v1360_v56, %s1584_s9  ;;  %v1362_v60 = vpop.eup %1361 }
 0x41e   : > { %v669_v61 = vadd.f32 1.0, %v1362_v60 }
 0x420   : > { %1363 = vrcp.f32 %v669_v61  ;;  %v681_v6 = vand.u32 2147483648, %v669_v61  ;;  %vm675_vm14 = vweird.f32 %v669_v61  ;;  %v679_v8 = vand.u32 2147483647, %v669_v61 }
 0x422   : > { %v682_v11 = vor.u32 1.1754944e-38, %v681_v6  ;;  %vm680_vm0 = vcmp.eq.f32.partialorder %v679_v8, 8.507059e+37 }
 0x426   : > { %v1364_v0 = vpop.eup %1363 }
 0x427   : > { %v671_v1 = vmul.f32 %v1364_v0, %v669_v61  ;;  %vm676_vm13 = vweird.f32 %v1364_v0 }
 0x428   : > { %vm677_vm15 = vmor %vm675_vm14, %vm676_vm13 }
 0x429   : > { %v672_v3 = vsub.f32 1.0, %v671_v1 }
 0x42b   : > { %v673_v4 = vmul.f32 %v1364_v0, %v672_v3 }
 0x42d   : > { %v674_v5 = vadd.f32 %v1364_v0, %v673_v4 }
 0x42f   : > { %v678_v9 = vsel %vm677_vm15, %v1364_v0, %v674_v5 }
 0x430   : > { %v683_v12 = vsel %vm680_vm0, %v682_v11, %v678_v9 }
 0x431   : > { %v695_v15 = vsub.f32 1.0, %v683_v12  ;;  %v701_v13 = vmul.f32 %v683_v12, %v1783_v41 }
 0x477   : > { %v698_v16 = vpop.permute.xlu2 %697 }
 0x478   : > { %v700_v17 = vmul.f32 %v698_v16, %v695_v15 }
 0x47a   : > { %v1800_v19 = vadd.f32 %v701_v13, %v700_v17 }
 0x47c   : > { %712 = vrot.lane.b32.xlu1 %v1800_v19, %s1584_s9 }
 0x484   : > { %788 = vrot.lane.b32.xlu1 %v757_v27, %s1584_s9 }
 0x4ee   : > { %v1808_v41 = vpop.permute.xlu1 %712 }
 0x4ef   : > { %1243 = vmatmul.msk.f32.vlgmr.msra.gmra.mxu1 %vm275_vm1, %v1808_v41 }
 0x4f6   : > { %v1821_v30 = vpop.permute.xlu1 %788 }
 0x4f7   : > { %1244 = vmatmul.msk.f32.vlgmr.msrb.gmra.mxu1 %vm275_vm1, %v1808_v41 }
 0x56c   : > { %v733_v28 = vpop.f32.mrf.mxu1 }
 0x56d   : > { %759 = vrot.lane.b32.xlu1 %v733_v28, %s1585_s11  ;;  %816 = vrot.lane.b32.xlu2 %v733_v28, %s1587_s12  ;;  %s1522_s12 = scalar_lea.hbm %s1911_s4, 64 }
 0x56e   : > { %818 = vrot.lane.b32.xlu0 %v733_v28, %s1588_s13 }
 0x574   : > { %v1815_v29 = vpop.f32.mrf.mxu1 }
 0x575   : > { %871 = vrot.lane.b32.xlu1 %v1815_v29, %s1584_s9 }
 0x57d   : > { %922 = vrot.lane.b32.xlu1 %v733_v28, %s1583_s21 }
 0x585   : > { %1003 = vrot.lane.b32.xlu1 %v733_v28, %s1589_s14 }
 0x58d   : > { %920 = vrot.lane.b32.xlu1 %v733_v28, %s1584_s9 }
 0x595   : > { %1001 = vrot.lane.b32.xlu1 %v733_v28, %s1590_s20 }
 0x5c7   : > { %v817_v33 = vpop.permute.xlu2 %816 }
 0x5df   : > { %v760_v31 = vpop.permute.xlu1 %759 }
 0x5e0   : > { %v819_v32 = vpop.permute.xlu0 %818  ;;  %1246 = vmatpush.xpose.msk.msra.mxu0 %vm761_vm3, %v760_v31 }
 0x5e1   : > { %1248 = vmatpush.xpose.msk.msra.mxu1 %vm761_vm3, %v819_v32 }
 0x5e3   : > { %1247 = vmatmul.msk.f32.vlgmr.msra.gmra.mxu0 %vm761_vm3, %v733_v28 }
 0x5e4   : > { %1249 = vmatmul.msk.f32.vlgmr.msra.gmra.mxu1 %vm761_vm3, %v817_v33 }
 0x5e5   : > { %915 = vmatpush.msrb.mxu1 %v1815_v29 }
 0x5e7   : > { %v872_v14 = vpop.permute.xlu1 %871 }
 0x5e8   : > { %892 = vmatpush.msrb.mxu0 %v872_v14 }
 0x5ef   : > { %v923_v34 = vpop.permute.xlu1 %922 }
 0x5f0   : > { %1252 = vmatpush.xpose.msk.msra.mxu0 %vm761_vm3, %v923_v34 }
 0x5f7   : > { %v1004_v35 = vpop.permute.xlu1 %1003 }
 0x5f8   : > { %1255 = vmatpush.xpose.msk.msra.mxu3 %vm761_vm3, %v1004_v35 }
 0x5ff   : > { %v921_v36 = vpop.permute.xlu1 %920 }
 0x607   : > { %v1002_v37 = vpop.permute.xlu1 %1001 }
 0x608   : > { %1256 = vmatmul.msk.f32.vlgmr.msra.gmra.mxu3 %vm761_vm3, %v1002_v37 }
 0x660   : > { %v783_v49 = vpop.f32.mrf.mxu0 }
 0x661   : > { %v841_v38 = vpop.f32.mrf.mxu1  ;;  %v786_v51 = vmul.f32 0.25, %v783_v49 }
 0x662   : > { %v844_v39 = vmul.f32 0.25, %v841_v38 }
 0x663   : > { %v791_v53 = vadd.f32 %v1821_v30, %v786_v51 }
 0x664   : > { %v845_v40 = vadd.f32 %v844_v39, %v1821_v30 }
 0x665   : > { %v792_v54 = vsel %vm389_vm4, %v791_v53, -inf }
 0x666   : > { %v846_v42 = vsel %vm389_vm4, %v845_v40, -inf }
 0x667   : > { %847 = vmax.xlane.f32.xlu0 %v846_v42 }
 0x68b   : > { %v1026_v43 = vpop.f32.mrf.mxu3 }
 0x68c   : > { %v1029_v44 = vmul.f32 0.25, %v1026_v43 }
 0x68e   : > { %v1030_v7 = vadd.f32 %v1029_v44, %v1821_v30 }
 0x690   : > { %v1031_v45 = vsel %vm389_vm4, %v1030_v7, -inf }
 0x691   : > { %1032 = vmax.xlane.f32.xlu1 %v1031_v45 }
 0x6da   : > { %v848_v46 = vpop.xlane.xlu0 %847 }
 0x6db   : > { %v849_v47 = vsub.f32 %v845_v40, %v848_v46 }
 0x6dd   : > { %v850_v48 = vmul.f32 1.442695, %v849_v47 }
 0x6df   : > { %1365 = vpow2.f32 %v850_v48 }
 0x6e5   : > { %v1366_v50 = vpop.eup %1365 }
 0x6e6   : > { %v852_v52 = vsel %vm389_vm4, %v1366_v50, 0.0 }
 0x6e7   : > { %853 = vadd.xlane.f32.xlu2 %v852_v52 }
 0x6ef   : > { %793 = vmax.xlane.f32.xlu2 %v792_v54 }
 0x704   : > { %v1033_v57 = vpop.xlane.xlu1 %1032 }
 0x705   : > { %v1034_v62 = vsub.f32 %v1030_v7, %v1033_v57 }
 0x707   : > { %v1035_v3 = vmul.f32 1.442695, %v1034_v62 }
 0x75a   : > { %v854_v55 = vpop.xlane.xlu2 %853 }
 0x75b   : > { %1367 = vrcp.f32 %v854_v55  ;;  %v866_v63 = vand.u32 2147483648, %v854_v55  ;;  %v864_v1 = vand.u32 2147483647, %v854_v55  ;;  %vm860_vm6 = vweird.f32 %v854_v55 }
 0x75d   : > { %v867_v4 = vor.u32 1.1754944e-38, %v866_v63  ;;  %vm865_vm8 = vcmp.eq.f32.partialorder %v864_v1, 8.507059e+37  ;;  %v1592_v1 = vmov 0.0  }
 0x761   : > { %v1368_v56 = vpop.eup %1367 }
 0x762   : > { %v856_v58 = vmul.f32 %v1368_v56, %v854_v55  ;;  %v794_v59 = vpop.xlane.xlu2 %793  ;;  %vm861_vm5 = vweird.f32 %v1368_v56 }
 0x763   : > { %v795_v60 = vsub.f32 %v791_v53, %v794_v59  ;;  %vm862_vm7 = vmor %vm860_vm6, %vm861_vm5 }
 0x764   : > { %v857_v61 = vsub.f32 1.0, %v856_v58 }
 0x765   : > { %v796_v0 = vmul.f32 1.442695, %v795_v60 }
 0x766   : > { %v858_v10 = vmul.f32 %v1368_v56, %v857_v61 }
 0x767   : > { %1369 = vpow2.f32 %v796_v0 }
 0x768   : > { %v859_v2 = vadd.f32 %v1368_v56, %v858_v10  ;;  %1371 = vpow2.f32 %v1035_v3 }
 0x76a   : > { %v863_v5 = vsel %vm862_vm7, %v1368_v56, %v859_v2  ;;  %vm371_vm7 = vcmp.eq.f32.partialorder %v1791_v24, %v1765_v18 }
 0x76b   : > { %v868_v6 = vsel %vm865_vm8, %v867_v4, %v863_v5  ;;  %v1240_v2 = vsel %vm371_vm7, 1.0, %v1592_v1 }
 0x76c   : > { %v869_v8 = vmul.f32 %v1366_v50, %v868_v6 }
 0x76d   : > { %v1370_v9 = vpop.eup %1369 }
 0x76e   : > { %1250 = vmatmul.msk.f32.vlgmr.msrb.gmra.mxu0 %vm389_vm4, %v869_v8  ;;  %v798_v11 = vsel %vm389_vm4, %v1370_v9, 0.0  ;;  %v1372_v12 = vpop.eup %1371 }
 0x76f   : > { %799 = vadd.xlane.f32.xlu2 %v798_v11  ;;  %v1037_v15 = vsel %vm389_vm4, %v1372_v12, 0.0 }
 0x776   : > { %1253 = vmatmul.msk.f32.vlgmr.msra.gmra.mxu0 %vm761_vm3, %v921_v36 }
 0x777   : > { %1038 = vadd.xlane.f32.xlu2 %v1037_v15 }
 0x78f   : > { %1055 = vrot.lane.b32.xlu2 %v1815_v29, %s1583_s21 }
 0x7e2   : > { %v800_v16 = vpop.xlane.xlu2 %799 }
 0x7e3   : > { %1373 = vrcp.f32 %v800_v16  ;;  %v812_v23 = vand.u32 2147483648, %v800_v16  ;;  %v810_v27 = vand.u32 2147483647, %v800_v16  ;;  %vm806_vm10 = vweird.f32 %v800_v16 }
 0x7e5   : > { %v813_v32 = vor.u32 1.1754944e-38, %v812_v23  ;;  %vm811_vm12 = vcmp.eq.f32.partialorder %v810_v27, 8.507059e+37  ;;  %v1381_v27 = vld [vmem:[#allocation2] sm:$0xff] }
 0x7e9   : > { %v1374_v17 = vpop.eup %1373 }
 0x7ea   : > { %v802_v13 = vmul.f32 %v1374_v17, %v800_v16  ;;  %v1039_v20 = vpop.xlane.xlu2 %1038  ;;  %vm807_vm9 = vweird.f32 %v1374_v17 }
 0x7eb   : > { %1375 = vrcp.f32 %v1039_v20  ;;  %v1844_v21 = vpop.f32.mrf.mxu0  ;;  %vm808_vm11 = vmor %vm806_vm10, %vm807_vm9  ;;  %v1051_v40 = vand.u32 2147483648, %v1039_v20  ;;  %v1049_v43 = vand.u32 2147483647, %v1039_v20  ;;  %vm1045_vm14 = vweird.f32 %v1039_v20 }
 0x7ec   : > { %v803_v22 = vsub.f32 1.0, %v802_v13  ;;  %vm368_vm9 = vcmp.lt.f32.partialorder %v1791_v24, %v1765_v18 }
 0x7ed   : > { %v1052_v46 = vor.u32 1.1754944e-38, %v1051_v40  ;;  %vm1050_vm0 = vcmp.eq.f32.partialorder %v1049_v43, 8.507059e+37  ;;  %v1239_v5 = vsel %vm368_vm9, 1.0, %v1592_v1 }
 0x7ee   : > { %v804_v26 = vmul.f32 %v1374_v17, %v803_v22 }
 0x7f0   : > { %v805_v28 = vadd.f32 %v1374_v17, %v804_v26 }
 0x7f1   : > { %v1376_v31 = vpop.eup %1375 }
 0x7f2   : > { %v809_v33 = vsel %vm808_vm11, %v1374_v17, %v805_v28  ;;  %v1041_v14 = vmul.f32 %v1376_v31, %v1039_v20  ;;  %v1056_v34 = vpop.permute.xlu2 %1055  ;;  %vm1046_vm13 = vweird.f32 %v1376_v31 }
 0x7f3   : > { %v814_v35 = vsel %vm811_vm12, %v813_v32, %v809_v33  ;;  %v945_v36 = vpop.f32.mrf.mxu0  ;;  %1076 = vmatpush.msra.mxu1 %v1056_v34  ;;  %vm1047_vm15 = vmor %vm1045_vm14, %vm1046_vm13 }
 0x7f4   : > { %v1042_v37 = vsub.f32 1.0, %v1041_v14  ;;  %v948_v38 = vmul.f32 0.25, %v945_v36  ;;  %v815_v39 = vmul.f32 %v1370_v9, %v814_v35 }
 0x7f6   : > { %v1043_v42 = vmul.f32 %v1376_v31, %v1042_v37  ;;  %v949_v44 = vadd.f32 %v948_v38, %v1821_v30  ;;  %1251 = vmatmul.msk.f32.vlgmr.msrb.gmra.mxu1 %vm389_vm4, %v815_v39 }
 0x7f8   : > { %v1044_v7 = vadd.f32 %v1376_v31, %v1043_v42  ;;  %v950_v45 = vsel %vm389_vm4, %v949_v44, -inf }
 0x7f9   : > { %951 = vmax.xlane.f32.xlu0 %v950_v45 }
 0x7fa   : > { %v1048_v47 = vsel %vm1047_vm15, %v1376_v31, %v1044_v7 }
 0x7fb   : > { %v1053_v48 = vsel %vm1050_vm0, %v1052_v46, %v1048_v47 }
 0x7fc   : > { %v1054_v49 = vmul.f32 %v1372_v12, %v1053_v48 }
 0x7fe   : > { %1257 = vmatmul.msk.f32.vlgmr.msra.gmra.mxu1 %vm389_vm4, %v1054_v49 }
 0x80d   : > { %974 = vrot.lane.b32.xlu0 %v1815_v29, %s1585_s11 }
 0x86c   : > { %v952_v50 = vpop.xlane.xlu0 %951 }
 0x86d   : > { %v953_v30 = vsub.f32 %v949_v44, %v952_v50 }
 0x86f   : > { %v954_v51 = vmul.f32 1.442695, %v953_v30 }
 0x871   : > { %1377 = vpow2.f32 %v954_v51 }
 0x873   : > { %v917_v11 = vpop.f32.mrf.mxu1 }
 0x874   : > { %v918_v12 = vadd.f32 %v917_v11, %v1844_v21 }
 0x877   : > { %v1378_v52 = vpop.eup %1377 }
 0x878   : > { %v956_v53 = vsel %vm389_vm4, %v1378_v52, 0.0 }
 0x879   : > { %957 = vadd.xlane.f32.xlu0 %v956_v53 }
 0x87b   : > { %v1078_v15 = vpop.f32.mrf.mxu1 }
 0x87f   : > { %v975_v54 = vpop.permute.xlu0 %974 }
 0x880   : > { %995 = vmatpush.msra.mxu2 %v975_v54 }
 0x88d   : > { %375 = vrot.lane.b32.xlu0 %v1804_v25, %s1591_s24 }
 0x8ec   : > { %v958_v55 = vpop.xlane.xlu0 %957 }
 0x8ed   : > { %1379 = vrcp.f32 %v958_v55  ;;  %v970_v59 = vand.u32 2147483648, %v958_v55  ;;  %v968_v60 = vand.u32 2147483647, %v958_v55  ;;  %vm964_vm5 = vweird.f32 %v958_v55 }
 0x8ef   : > { %v971_v62 = vor.u32 1.1754944e-38, %v970_v59  ;;  %vm969_vm8 = vcmp.eq.f32.partialorder %v968_v60, 8.507059e+37 }
 0x8f3   : > { %v1380_v56 = vpop.eup %1379 }
 0x8f4   : > { %v960_v57 = vmul.f32 %v1380_v56, %v958_v55  ;;  %vm965_vm3 = vweird.f32 %v1380_v56 }
 0x8f5   : > { %vm966_vm6 = vmor %vm964_vm5, %vm965_vm3 }
 0x8f6   : > { %v961_v58 = vsub.f32 1.0, %v960_v57 }
 0x8f8   : > { %v962_v29 = vmul.f32 %v1380_v56, %v961_v58 }
 0x8fa   : > { %v963_v61 = vadd.f32 %v1380_v56, %v962_v29 }
 0x8fc   : > { %v967_v63 = vsel %vm966_vm6, %v1380_v56, %v963_v61 }
 0x8fd   : > { %v972_v0 = vsel %vm969_vm8, %v971_v62, %v967_v63 }
 0x8fe   : > { %v973_v10 = vmul.f32 %v1378_v52, %v972_v0 }
 0x8ff   : > { %v376_v3 = vpop.permute.xlu0 %375 }
 0x900   : > { %v378_v4 = vmul.f32 %v1240_v2, %v376_v3  ;;  %1254 = vmatmul.msk.f32.vlgmr.msra.gmra.mxu2 %vm389_vm4, %v973_v10 }
 0x902   : > { %v379_v6 = vadd.f32 %v1239_v5, %v378_v4 }
 0x904   : > { %381 = vrot.lane.b32.xlu0 %v379_v6, %s1583_s21 }
 0x976   : > { %v382_v8 = vpop.permute.xlu0 %381 }
 0x977   : > { %v384_v9 = vmul.f32 %v382_v8, %v1804_v25 }
 0x979   : > { %386 = vrot.lane.b32.xlu2 %v384_v9, %s1584_s9 }
 0x983   : > { %v997_v18 = vpop.f32.mrf.mxu2 }
 0x984   : > { %v1000_v24 = vadd.f32 %v997_v18, %v918_v12 }
 0x986   : > { %v1081_v16 = vadd.f32 %v1078_v15, %v1000_v24 }
 0x988   : > { %v1082_v17 = vadd.f32 %v1081_v16, %v1804_v25 }
 0x98a   : > { %v1084_v13 = vadd.f32 %v1082_v17, %v1808_v41 }
 0x98c   : > { %1086 = vrot.lane.b32.xlu0 %v1084_v13, %s1583_s21 }
 0x9d3   : > { %v387_v20 = vpop.permute.xlu2 %386 }
 0x9d4   : > { %v390_v22 = vsel %vm389_vm4, %v387_v20, 0.0 }
 0x9d5   : > { %391 = vadd.xlane.f32.xlu1 %v390_v22 }
 0x9fe   : > { %v1087_v25 = vpop.permute.xlu0 %1086 }
 0x9ff   : > { %v1089_v41 = vadd.f32 %v1087_v25, %v1800_v19 }
 0xa48   : > { %v392_v23 = vpop.xlane.xlu1 %391 }
 0xa49   : > { %vm393_vm10 = vcmp.ge.f32.partialorder %v392_v23, 2.0 }
 0xa4a   : > { %v394_v26 = vsel %vm393_vm10, 1.0, %v1592_v1 }
 0xa4b   : > { %v1091_v21 = vsub.f32 1.0, %v394_v26  ;;  %v1090_v31 = vmul.f32 %v1089_v41, %v394_v26 }
 0xa4d   : > { %v1092_v28 = vmul.f32 %v1381_v27, %v1091_v21 }
 0xa4f   : > { %1094 = vrot.lane.b32.xlu2 %v1092_v28, %s1583_s21  ;;  %s1516_s21 = sshra.s32 %s1121_s8, 4  ;;  %s1517_s21 = int_to_ptr.hbm [resolvable:$true] %s1516_s21 }
 0xa50   : > { %p1523_p10 = scmp.lt.s32.totalorder %s1517_s21, %s1911_s4 }
 0xaa9   : > { %v1095_v32 = vpop.permute.xlu2 %1094 }
 0xaaa   : > { %v1097_v33 = vadd.f32 %v1095_v32, %v1090_v31 }
 0xaac   : > { %1099 = vrot.lane.b32.xlu1 %v1097_v33, %s1584_s9  ;;  %s1518_s9 = scalar_lea.hbm %s1517_s21, 8 }
 0xaad   : > { %p1519_p1 = scmp.ne.s32.totalorder %s1517_s21, %s1518_s9  ;;  %p1524_p2 = scmp.lt.s32.totalorder %s1522_s12, %s1518_s9 }
 0xaaf   : > { %p1520_p4 = pnand %p1519_p1, %p1700_p3  ;;  %p1525_p11 = por %p1524_p2, %p1523_p10 }
 0xab1   : > { %p1521_p9 = pneg %p1520_p4 }
 0xab3   : > { %p1526_p12 = pnand %p1525_p11, %p1521_p9 }
 0xb1e   : > { %v1100_v14 = vpop.permute.xlu1 %1099 }
 0xb1f   : > { %1102 = vst.msk [vmem:[#allocation2] sm:$0xff] %vm275_vm1, %v1100_v14  ;;  %v1103_v19 = vsel %vm275_vm1, %v1100_v14, %v394_v26 }
 0xb20   : > { %1104 = vst.msk [vmem:[%s1743_s26] sm:$0xff] %vm285_vm2, %v1103_v19 }
 0xb21   : > { %1529 = shalt.err (!%p1526_p12)
}
 0xb22   : > { %1276 = dma.vmem_to_hbm [thread:$0]  (%p1700_p3), %s1119_s7, 128, %s1121_s8, %s1106_s10  }
 0xb23 PF: > { %p1303_p13 = scmp.ge.s32.totalorder %s1576_s18, 2  ;;  %s1132_s29 = sand.u32 1, %s1564_s15  }
 0xb24   : > { %s1133_s26 = scalar_lea.sflag [#allocation5], %s1132_s29 }
 0xb25   : > { %p1293_p0 = pnand %p1303_p13, %p1653_p6 }
 0xb27   : > { %p1294_p5 = pneg %p1293_p0 }
 0xb29   : > { %1559 = dma.done.wait (%p1294_p5), %s1133_s26, 128  }
 0xb2a   : > { %1561 = vsyncadd (%p1294_p5), %s1133_s26, 4294967168  ;;  %p19_p7 = scmp.ge.s32.totalorder %s1687_s23, 10   ;;  %s1919_s15 = smov %s1568_s16 }
 0xb2b   : > { %s1920_s16 = smov %s1572_s17  ;;  %s1921_s17 = smov %s1696_s27 }
 0xb2c   : > { %s1922_s18 = smov %s1687_s23  ;;  %21 = sbr.rel (!%p19_p7) target bundleno = 7 (0x7), region = 97 }
 0xb31   :  { %1139 = vsyncpa [#allocation4], 1 }
 0xb32   :  { %1141 = vsyncpa [#allocation4 + $0x1], 1 }
 0xb33   :  { %1142 = vsyncpa [#allocation7], 1 }
 0xb34   :  { %1143 = vsyncpa [#allocation10], 1 }
 0xb35   :  { %1144 = vsyncpa [#allocation5], 1 }
 0xb36   :  { %1146 = vsyncpa [#allocation5 + $0x1], 1 }

</bundles_post_ra>
